<compile_context>
chip_gen: v5e
topology: v5e:2x2
jax: 0.10.0
libtpu: 0.0.40
codegen_flags: <defaults>
</compile_context>

<pallas_src>
import jax
import jax.numpy as jnp
from jax import lax
from jax.experimental import pallas as pl
from jax.experimental.pallas import tpu as pltpu


def _round_up(n, m):
    return (n + m - 1) // m * m


# ---------------------------------------------------------------------------
# Fused Pallas kernel: 4 matmuls + bias/ReLU epilogues + log_softmax
# ---------------------------------------------------------------------------
def _fused_kernel(x_ref, w1_ref, b1_ref, w2_ref, b2_ref,
                  w3_ref, b3_ref, w4_ref, b4_ref, o_ref):
    # x_ref: (TB, 16) bf16 pooled pixels; weights bf16, biases f32 (1, N).
    h = jnp.dot(x_ref[...], w1_ref[...], preferred_element_type=jnp.float32)
    h = jnp.maximum(h + b1_ref[...], 0.0).astype(jnp.bfloat16)       # conv1 + ReLU
    h = jnp.dot(h, w2_ref[...], preferred_element_type=jnp.float32)
    h = jnp.maximum(h + b2_ref[...], 0.0).astype(jnp.bfloat16)       # conv2 + ReLU (flatten order)
    h = jnp.dot(h, w3_ref[...], preferred_element_type=jnp.float32)
    h = jnp.maximum(h + b3_ref[...], 0.0).astype(jnp.bfloat16)       # fc1 + ReLU
    # fc2 (N=128 lane-dense; pad columns carry -1e9 bias so softmax is unchanged)
    y = jnp.dot(h, w4_ref[...], preferred_element_type=jnp.float32) + b4_ref[...]
    m = jnp.max(y, axis=-1, keepdims=True)                           # stable log_softmax
    s = y - m
    o_ref[...] = (s - jnp.log(jnp.sum(jnp.exp(s), axis=-1, keepdims=True))
                  ).astype(o_ref.dtype)


# ---------------------------------------------------------------------------
# Wrapper-side weight packing (pure layout / linear-algebra prep, runs once)
# ---------------------------------------------------------------------------
def _pack_params(params):
    f32 = jnp.float32

    # --- 4x4 spatial neighbor structure shared by both 3x3 / pad=1 convs ---
    pix = jnp.arange(16)
    pi, qi = pix // 4, pix % 4
    di = pi[:, None] - pi[None, :] + 1                              # (16_in, 16_out) kernel tap
    dj = qi[:, None] - qi[None, :] + 1
    valid = (di >= 0) & (di < 3) & (dj >= 0) & (dj < 3)
    dic, djc = jnp.clip(di, 0, 2), jnp.clip(dj, 0, 2)

    # conv1: (32,1,3,3) OIHW -> dense (16_in, 16_out*32); column = pout*32 + cout
    w1k = jnp.transpose(params["conv1_w"].astype(f32)[:, 0], (1, 2, 0))     # (3,3,32)
    W1 = jnp.where(valid[:, :, None], w1k[dic, djc, :], 0.0).reshape(16, 16 * 32)
    b1 = jnp.tile(params["conv1_b"].astype(f32), 16)                        # (512,)

    # conv2: (64,32,3,3) OIHW -> dense (512, 1024);
    # row = pin*32 + cin, col = cout*16 + pout  (== torch.flatten order on NCHW)
    w2t = jnp.transpose(params["conv2_w"].astype(f32), (2, 3, 1, 0))        # (3,3,32,64)
    T2 = jnp.where(valid[:, :, None, None], w2t[dic, djc], 0.0)             # (16,16,32,64)
    W2 = jnp.transpose(T2, (0, 2, 3, 1)).reshape(16 * 32, 16 * 64)          # (512, 1024)
    b2 = jnp.repeat(params["conv2_b"].astype(f32), 16)                      # (1024,)

    W3 = params["fc1_w"].astype(f32).T                                      # (1024, 128)
    b3 = params["fc1_b"].astype(f32)

    # fc2 padded to 128 output lanes (lane-dense unmasked stores); pad weight
    # columns with 0 and pad biases with -1e9 so the 128-wide log_softmax equals
    # the real 10-wide one on the first 10 columns.
    W4 = jnp.zeros((128, 128), f32).at[:, :10].set(params["fc2_w"].astype(f32).T)
    b4 = jnp.full((128,), -1e9, f32).at[:10].set(params["fc2_b"].astype(f32))

    bf = jnp.bfloat16
    return (W1.astype(bf), b1.reshape(1, -1),
            W2.astype(bf), b2.reshape(1, -1),
            W3.astype(bf), b3.reshape(1, -1),
            W4.astype(bf), b4.reshape(1, -1))


# ---------------------------------------------------------------------------
# Forward pass
# ---------------------------------------------------------------------------
def forward(params, x, *, block_rows=1024):
    """x: NCHW float32 [B, 1, 28, 28] -> log-probabilities [B, 10]."""
    B, C, H, W = x.shape
    W1, b1, W2, b2, W3, b3, W4, b4 = _pack_params(params)

    # avg_pool2d(kernel=6, stride=6), floor mode -> (B,1,4,4), done in f32 in the
    # wrapper (better numerics, 49x less kernel input traffic).
    Ph, Pw = H // 6, W // 6                                          # 4, 4 for 28x28
    pooled = x.astype(jnp.float32)[:, :, :Ph * 6, :Pw * 6]
    pooled = pooled.reshape(B, C, Ph, 6, Pw, 6).mean(axis=(3, 5))
    x16 = pooled.reshape(B, Ph * Pw * C).astype(jnp.bfloat16)        # (B, 16)

    # Batch tiling: multiples of 16 (bf16 sublane packing); keep >=2 grid steps
    # when the batch is big enough so v7x's two TensorCores both get work.
    TB = min(block_rows, _round_up(B, 16))
    if _round_up(B, TB) // TB < 2 and B > 16:
        TB = max(16, _round_up((B + 1) // 2, 16))
    Bp = _round_up(B, TB)
    if Bp != B:
        x16 = jnp.pad(x16, ((0, Bp - B), (0, 0)))

    # Explicit VMEM budget (v5e's default scoped limit is only 16 MiB).
    weight_bytes = sum(int(a.size) * a.dtype.itemsize
                       for a in (W1, b1, W2, b2, W3, b3, W4, b4))
    interm_bytes = TB * (512 + 1024 + 128 + 128) * 4 + TB * (512 + 1024 + 128) * 2
    io_bytes = 2 * TB * 16 * 2 + 2 * TB * 128 * 4
    est = 2 * weight_bytes + interm_bytes + io_bytes
    vmem_limit = min(max(int(1.5 * est), 32 << 20), 56 << 20)

    flops = 2 * Bp * (16 * 512 + 512 * 1024 + 1024 * 128 + 128 * 128)
    bytes_accessed = (x16.size * 2 + Bp * 128 * 4 + weight_bytes)

    def _resident(a):   # full array, constant index_map, single-buffered in VMEM
        return pl.BlockSpec(a.shape, lambda i: (0,) * a.ndim,
                            pipeline_mode=pl.Buffered(1))

    out = pl.pallas_call(
        _fused_kernel,
        out_shape=jax.ShapeDtypeStruct((Bp, 128), jnp.float32),
        grid=(Bp // TB,),
        in_specs=[
            pl.BlockSpec((TB, 16), lambda i: (i, 0)),
            _resident(W1), _resident(b1),
            _resident(W2), _resident(b2),
            _resident(W3), _resident(b3),
            _resident(W4), _resident(b4),
        ],
        out_specs=pl.BlockSpec((TB, 128), lambda i: (i, 0)),
        compiler_params=pltpu.CompilerParams(
            dimension_semantics=("parallel",),
            vmem_limit_bytes=vmem_limit),
        cost_estimate=pl.CostEstimate(
            flops=flops, transcendentals=Bp * 128, bytes_accessed=bytes_accessed),
    )(x16, W1, b1, W2, b2, W3, b3, W4, b4)
    return out[:B, :10]


# ---------------------------------------------------------------------------
# Parameter init (PyTorch-style uniform) and pure-JAX reference
# ---------------------------------------------------------------------------
def init_params(key):
    ks = jax.random.split(key, 8)

    def u(k, shape, fan_in):
        bound = 1.0 / jnp.sqrt(float(fan_in))
        return jax.random.uniform(k, shape, jnp.float32, -bound, bound)

    return {
        "conv1_w": u(ks[0], (32, 1, 3, 3), 9),       # OIHW
        "conv1_b": u(ks[1], (32,), 9),
        "conv2_w": u(ks[2], (64, 32, 3, 3), 288),
        "conv2_b": u(ks[3], (64,), 288),
        "fc1_w": u(ks[4], (128, 1024), 1024),        # (out, in)
        "fc1_b": u(ks[5], (128,), 1024),
        "fc2_w": u(ks[6], (10, 128), 128),
        "fc2_b": u(ks[7], (10,), 128),
    }


def reference(params, x):
    B = x.shape[0]
    xp = x[:, :, :24, :24].reshape(B, 1, 4, 6, 4, 6).mean(axis=(3, 5))
    y = lax.conv_general_dilated(xp, params["conv1_w"], (1, 1), ((1, 1), (1, 1)),
                                 dimension_numbers=("NCHW", "OIHW", "NCHW"))
    y = jax.nn.relu(y + params["conv1_b"][None, :, None, None])
    y = lax.conv_general_dilated(y, params["conv2_w"], (1, 1), ((1, 1), (1, 1)),
                                 dimension_numbers=("NCHW", "OIHW", "NCHW"))
    y = jax.nn.relu(y + params["conv2_b"][None, :, None, None])
    y = y.reshape(B, -1)
    y = jax.nn.relu(y @ params["fc1_w"].T + params["fc1_b"])
    y = y @ params["fc2_w"].T + params["fc2_b"]
    return jax.nn.log_softmax(y, axis=1)


if __name__ == "__main__":
    key = jax.random.PRNGKey(0)
    kx, kp = jax.random.split(key)
    # fc1 expects 1024 = 64*4*4 features => 28x28 single-channel input (MNIST-like).
    params = init_params(kp)
    fwd = jax.jit(forward)

    # small-batch check (single grid step)
    x = jax.random.normal(kx, (2, 1, 28, 28), jnp.float32)
    out = jax.block_until_ready(fwd(params, x))
    ref = reference(params, x)
    assert out.shape == (2, 10), out.shape
    assert jnp.allclose(out, ref, atol=3e-2, rtol=3e-2), float(jnp.max(jnp.abs(out - ref)))

    # multi-step check (batch padding + 2 "parallel" grid steps)
    x2 = jax.random.normal(jax.random.PRNGKey(1), (33, 1, 28, 28), jnp.float32)
    out2 = jax.block_until_ready(fwd(params, x2))
    ref2 = reference(params, x2)
    assert out2.shape == (33, 10), out2.shape
    assert jnp.allclose(out2, ref2, atol=3e-2, rtol=3e-2), float(jnp.max(jnp.abs(out2 - ref2)))

    print("KERNEL_OK")
</pallas_src>

<mosaic_0001>
module attributes {stable_mosaic.version = 11 : i64} {
  func.func @_fused_kernel(%arg0: i32, %arg1: memref<16x16xbf16, #tpu.memory_space<vmem>>, %arg2: memref<16x512xbf16, #tpu.memory_space<vmem>>, %arg3: memref<1x512xf32, #tpu.memory_space<vmem>>, %arg4: memref<512x1024xbf16, #tpu.memory_space<vmem>>, %arg5: memref<1x1024xf32, #tpu.memory_space<vmem>>, %arg6: memref<1024x128xbf16, #tpu.memory_space<vmem>>, %arg7: memref<1x128xf32, #tpu.memory_space<vmem>>, %arg8: memref<128x128xbf16, #tpu.memory_space<vmem>>, %arg9: memref<1x128xf32, #tpu.memory_space<vmem>>, %arg10: memref<16x128xf32, #tpu.memory_space<vmem>>) attributes {dimension_semantics = [#tpu.dimension_semantics<parallel>], iteration_bounds = array<i64: 1>, scalar_prefetch = 0 : i64, scratch_operands = 0 : i64, tpu.core_type = #tpu.core_type<tc>, window_params = [{transform_indices = @transform_0, window_bounds = array<i64: 16, 16>}, {pipeline_mode = #tpu.pipeline_mode<synchronous>, transform_indices = @transform_1, window_bounds = array<i64: 16, 512>}, {pipeline_mode = #tpu.pipeline_mode<synchronous>, transform_indices = @transform_2, window_bounds = array<i64: 1, 512>}, {pipeline_mode = #tpu.pipeline_mode<synchronous>, transform_indices = @transform_3, window_bounds = array<i64: 512, 1024>}, {pipeline_mode = #tpu.pipeline_mode<synchronous>, transform_indices = @transform_4, window_bounds = array<i64: 1, 1024>}, {pipeline_mode = #tpu.pipeline_mode<synchronous>, transform_indices = @transform_5, window_bounds = array<i64: 1024, 128>}, {pipeline_mode = #tpu.pipeline_mode<synchronous>, transform_indices = @transform_6, window_bounds = array<i64: 1, 128>}, {pipeline_mode = #tpu.pipeline_mode<synchronous>, transform_indices = @transform_7, window_bounds = array<i64: 128, 128>}, {pipeline_mode = #tpu.pipeline_mode<synchronous>, transform_indices = @transform_8, window_bounds = array<i64: 1, 128>}, {transform_indices = @transform_9, window_bounds = array<i64: 16, 128>}]} {
    %c0 = arith.constant 0 : index
    %c0_0 = arith.constant 0 : index
    %0 = vector.load %arg1[%c0, %c0_0] : memref<16x16xbf16, #tpu.memory_space<vmem>>, vector<16x16xbf16>
    %c0_1 = arith.constant 0 : index
    %c0_2 = arith.constant 0 : index
    %1 = vector.load %arg2[%c0_1, %c0_2] : memref<16x512xbf16, #tpu.memory_space<vmem>>, vector<16x512xbf16>
    %cst = arith.constant dense<0.000000e+00> : vector<16x512xf32>
    %2 = tpu.matmul %0, %1, %cst {dimension_numbers = #tpu.dot_dimension_numbers<[1], [0], [0], [1], [0, 0, 1, 1], [], []>} : vector<16x16xbf16>, vector<16x512xbf16>, vector<16x512xf32> -> vector<16x512xf32>
    %c0_3 = arith.constant 0 : index
    %c0_4 = arith.constant 0 : index
    %3 = vector.load %arg3[%c0_3, %c0_4] : memref<1x512xf32, #tpu.memory_space<vmem>>, vector<1x512xf32>
    %4 = vector.broadcast %3 : vector<1x512xf32> to vector<16x512xf32>
    %5 = arith.addf %2, %4 : vector<16x512xf32>
    %cst_5 = arith.constant 0.000000e+00 : f32
    %6 = vector.broadcast %cst_5 : f32 to vector<16x512xf32>
    %7 = arith.maximumf %5, %6 : vector<16x512xf32>
    %8 = arith.truncf %7 : vector<16x512xf32> to vector<16x512xbf16>
    %c0_6 = arith.constant 0 : index
    %c0_7 = arith.constant 0 : index
    %9 = vector.load %arg4[%c0_6, %c0_7] : memref<512x1024xbf16, #tpu.memory_space<vmem>>, vector<512x1024xbf16>
    %cst_8 = arith.constant dense<0.000000e+00> : vector<16x1024xf32>
    %10 = tpu.matmul %8, %9, %cst_8 {dimension_numbers = #tpu.dot_dimension_numbers<[1], [0], [0], [1], [0, 0, 1, 1], [], []>} : vector<16x512xbf16>, vector<512x1024xbf16>, vector<16x1024xf32> -> vector<16x1024xf32>
    %c0_9 = arith.constant 0 : index
    %c0_10 = arith.constant 0 : index
    %11 = vector.load %arg5[%c0_9, %c0_10] : memref<1x1024xf32, #tpu.memory_space<vmem>>, vector<1x1024xf32>
    %12 = vector.broadcast %11 : vector<1x1024xf32> to vector<16x1024xf32>
    %13 = arith.addf %10, %12 : vector<16x1024xf32>
    %cst_11 = arith.constant 0.000000e+00 : f32
    %14 = vector.broadcast %cst_11 : f32 to vector<16x1024xf32>
    %15 = arith.maximumf %13, %14 : vector<16x1024xf32>
    %16 = arith.truncf %15 : vector<16x1024xf32> to vector<16x1024xbf16>
    %c0_12 = arith.constant 0 : index
    %c0_13 = arith.constant 0 : index
    %17 = vector.load %arg6[%c0_12, %c0_13] : memref<1024x128xbf16, #tpu.memory_space<vmem>>, vector<1024x128xbf16>
    %cst_14 = arith.constant dense<0.000000e+00> : vector<16x128xf32>
    %18 = tpu.matmul %16, %17, %cst_14 {dimension_numbers = #tpu.dot_dimension_numbers<[1], [0], [0], [1], [0, 0, 1, 1], [], []>} : vector<16x1024xbf16>, vector<1024x128xbf16>, vector<16x128xf32> -> vector<16x128xf32>
    %c0_15 = arith.constant 0 : index
    %c0_16 = arith.constant 0 : index
    %19 = vector.load %arg7[%c0_15, %c0_16] : memref<1x128xf32, #tpu.memory_space<vmem>>, vector<1x128xf32>
    %20 = vector.broadcast %19 : vector<1x128xf32> to vector<16x128xf32>
    %21 = arith.addf %18, %20 : vector<16x128xf32>
    %cst_17 = arith.constant 0.000000e+00 : f32
    %22 = vector.broadcast %cst_17 : f32 to vector<16x128xf32>
    %23 = arith.maximumf %21, %22 : vector<16x128xf32>
    %24 = arith.truncf %23 : vector<16x128xf32> to vector<16x128xbf16>
    %c0_18 = arith.constant 0 : index
    %c0_19 = arith.constant 0 : index
    %25 = vector.load %arg8[%c0_18, %c0_19] : memref<128x128xbf16, #tpu.memory_space<vmem>>, vector<128x128xbf16>
    %cst_20 = arith.constant dense<0.000000e+00> : vector<16x128xf32>
    %26 = tpu.matmul %24, %25, %cst_20 {dimension_numbers = #tpu.dot_dimension_numbers<[1], [0], [0], [1], [0, 0, 1, 1], [], []>} : vector<16x128xbf16>, vector<128x128xbf16>, vector<16x128xf32> -> vector<16x128xf32>
    %c0_21 = arith.constant 0 : index
    %c0_22 = arith.constant 0 : index
    %27 = vector.load %arg9[%c0_21, %c0_22] : memref<1x128xf32, #tpu.memory_space<vmem>>, vector<1x128xf32>
    %28 = vector.broadcast %27 : vector<1x128xf32> to vector<16x128xf32>
    %29 = arith.addf %26, %28 : vector<16x128xf32>
    %cst_23 = arith.constant dense<0xFF800000> : vector<16xf32>
    %30 = vector.multi_reduction <maximumf>, %29, %cst_23 [1] : vector<16x128xf32> to vector<16xf32>
    %31 = vector.shape_cast %30 : vector<16xf32> to vector<16x1xf32>
    %32 = vector.broadcast %31 : vector<16x1xf32> to vector<16x128xf32>
    %33 = arith.subf %29, %32 : vector<16x128xf32>
    %34 = math.exp %33 : vector<16x128xf32>
    %cst_24 = arith.constant dense<0.000000e+00> : vector<16xf32>
    %35 = vector.multi_reduction <add>, %34, %cst_24 [1] : vector<16x128xf32> to vector<16xf32>
    %36 = vector.shape_cast %35 : vector<16xf32> to vector<16x1xf32>
    %37 = math.log %36 : vector<16x1xf32>
    %38 = vector.broadcast %37 : vector<16x1xf32> to vector<16x128xf32>
    %39 = arith.subf %33, %38 : vector<16x128xf32>
    %c0_25 = arith.constant 0 : index
    %c0_26 = arith.constant 0 : index
    %40 = vector.load %arg10[%c0_25, %c0_26] : memref<16x128xf32, #tpu.memory_space<vmem>>, vector<16x128xf32>
    tpu.vector_store %arg10[%c0_25, %c0_26], %39 {strides = array<i32>} : memref<16x128xf32, #tpu.memory_space<vmem>>, vector<16x128xf32>,
    return
  }
  func.func @transform_0(%arg0: i32) -> (i32, i32) {
    %c0_i32 = arith.constant 0 : i32
    %c0_i32_0 = arith.constant 0 : i32
    return %arg0, %c0_i32 : i32, i32
  }
  func.func @transform_1(%arg0: i32) -> (i32, i32) {
    %c0_i32 = arith.constant 0 : i32
    %c0_i32_0 = arith.constant 0 : i32
    %c0_i32_1 = arith.constant 0 : i32
    return %c0_i32, %c0_i32_0 : i32, i32
  }
  func.func @transform_2(%arg0: i32) -> (i32, i32) {
    %c0_i32 = arith.constant 0 : i32
    %c0_i32_0 = arith.constant 0 : i32
    %c0_i32_1 = arith.constant 0 : i32
    return %c0_i32, %c0_i32_0 : i32, i32
  }
  func.func @transform_3(%arg0: i32) -> (i32, i32) {
    %c0_i32 = arith.constant 0 : i32
    %c0_i32_0 = arith.constant 0 : i32
    %c0_i32_1 = arith.constant 0 : i32
    return %c0_i32, %c0_i32_0 : i32, i32
  }
  func.func @transform_4(%arg0: i32) -> (i32, i32) {
    %c0_i32 = arith.constant 0 : i32
    %c0_i32_0 = arith.constant 0 : i32
    %c0_i32_1 = arith.constant 0 : i32
    return %c0_i32, %c0_i32_0 : i32, i32
  }
  func.func @transform_5(%arg0: i32) -> (i32, i32) {
    %c0_i32 = arith.constant 0 : i32
    %c0_i32_0 = arith.constant 0 : i32
    %c0_i32_1 = arith.constant 0 : i32
    return %c0_i32, %c0_i32_0 : i32, i32
  }
  func.func @transform_6(%arg0: i32) -> (i32, i32) {
    %c0_i32 = arith.constant 0 : i32
    %c0_i32_0 = arith.constant 0 : i32
    %c0_i32_1 = arith.constant 0 : i32
    return %c0_i32, %c0_i32_0 : i32, i32
  }
  func.func @transform_7(%arg0: i32) -> (i32, i32) {
    %c0_i32 = arith.constant 0 : i32
    %c0_i32_0 = arith.constant 0 : i32
    %c0_i32_1 = arith.constant 0 : i32
    return %c0_i32, %c0_i32_0 : i32, i32
  }
  func.func @transform_8(%arg0: i32) -> (i32, i32) {
    %c0_i32 = arith.constant 0 : i32
    %c0_i32_0 = arith.constant 0 : i32
    %c0_i32_1 = arith.constant 0 : i32
    return %c0_i32, %c0_i32_0 : i32, i32
  }
  func.func @transform_9(%arg0: i32) -> (i32, i32) {
    %c0_i32 = arith.constant 0 : i32
    %c0_i32_0 = arith.constant 0 : i32
    return %arg0, %c0_i32 : i32, i32
  }
}

</mosaic_0001>

<bundles_post_ra>
// kernel: tile.8
= control target key start
LH: loop header
LB: loop body
LE: loop exit
PB: predicated region body
PF: predicated region fallthrough
CT: control target
= control target key end

     0   :  { %s28_s0 = inlined_call_operand.vmem [shape: f32[32], index: 0, kind: input, shape index: {}]   ;;  %s29_s1 = inlined_call_operand.vmem [shape: f32[16,32], index: 1, kind: output, shape index: {}]  }
   0x1   :  { %v4_v0 = vld [vmem:[%s28_s0] ss:$0 sm:$0xff] }
   0x2   :  { %5 = vst [vmem:[%s29_s1] sm:$0xff] %v4_v0 }
   0x3   :  { %8 = vst [vmem:[%s29_s1 + $0x8] sm:$0xff] %v4_v0 }

// kernel: tile.9
= control target key start
LH: loop header
LB: loop body
LE: loop exit
PB: predicated region body
PF: predicated region fallthrough
CT: control target
= control target key end

     0   :  { %s56_s8 = smov 96   ;;  %s57_s11 = smov 32   ;;  %vm3_vm0 = vcmask 261120   ;;  %vm9_vm1 = vcmask 1048320   ;;  %vm15_vm2 = vcmask 785920   ;;  %vm21_vm3 = vcmask 523520   ;;  %s93_s0 = inlined_call_operand.vmem [shape: f32[16,32], index: 0, kind: input, shape index: {}]   ;;  %s94_s1 = inlined_call_operand.vmem [shape: f32[1,512], index: 1, kind: output, shape index: {}]  }
   0x1   :  { %v47_v0 = vld [vmem:[%s93_s0 + $0x3] ss:$4 sm:$0xf]   ;;  %v49_v1 = vld [vmem:[%s93_s0 + $0x1] ss:$4 sm:$0xf]  }
   0x2   :  { %7 = vrot.lane.b32.xlu0 %v47_v0, %s56_s8  ;;  %19 = vrot.lane.b32.xlu1 %v49_v1, %s57_s11  ;;  %v48_v2 = vld [vmem:[%s93_s0 + $0x2] ss:$4 sm:$0xf]   ;;  %s58_s14 = smov 64  }
   0x3   :  { %v2_v3 = vld [vmem:[%s93_s0] ss:$4 sm:$0xf]  }
   0x4   :  { %4 = vst.msk [vmem:[#allocation0] ss:$8 sm:$0xf] %vm3_vm0, %v2_v3  }
   0xa   :  { %13 = vrot.lane.b32.xlu0 %v48_v2, %s58_s14 }
  0x74   :  { %v8_v4 = vpop.permute.xlu0 %7   ;;  %v20_v5 = vpop.permute.xlu1 %19  }
  0x75   :  { %10 = vst.msk [vmem:[#allocation0] ss:$8 sm:$0xf] %vm9_vm1, %v8_v4  }
  0x7c   :  { %v14_v6 = vpop.permute.xlu0 %13  }
  0x7d   :  { %16 = vst.msk [vmem:[#allocation0] ss:$8 sm:$0xf] %vm15_vm2, %v14_v6  }
  0x7e   :  { %22 = vst.msk [vmem:[#allocation0] ss:$8 sm:$0xf] %vm21_vm3, %v20_v5  }
  0x85   :  { %v25_v7 = vld [vmem:[#allocation0] sm:$0x1]  ;;  %v30_v8 = vld [vmem:[#allocation0 + $0x8] sm:$0x1]  ;;  %v36_v9 = vld [vmem:[#allocation0 + $0x10] sm:$0x1] }
  0x86   :  { %28 = vst [vmem:[%s94_s1] sm:$0x1] %v25_v7  ;;  %v42_v10 = vld [vmem:[#allocation0 + $0x18] sm:$0x1] }
  0x87   :  { %50 = vst [vmem:[%s94_s1 + $0x1] sm:$0x1] %v30_v8 }
  0x88   :  { %51 = vst [vmem:[%s94_s1 + $0x2] sm:$0x1] %v36_v9 }
  0x89   :  { %52 = vst [vmem:[%s94_s1 + $0x3] sm:$0x1] %v42_v10 }

// kernel: forward.1
= control target key start
LH: loop header
LB: loop body
LE: loop exit
PB: predicated region body
PF: predicated region fallthrough
CT: control target
= control target key end

     0   :  { %vm74_vm0 = vcmask 130048   ;;  %s6554_s1 = inlined_call_operand.vmem [shape: bf16[16,512], index: 1, kind: input, shape index: {}]   ;;  %s6555_s0 = inlined_call_operand.vmem [shape: bf16[16,16], index: 0, kind: input, shape index: {}]   ;;  %s6556_s3 = inlined_call_operand.vmem [shape: bf16[512,1024], index: 3, kind: input, shape index: {}]   ;;  %s6557_s2 = inlined_call_operand.vmem [shape: f32[1,512], index: 2, kind: input, shape index: {}]   ;;  %s6558_s5 = inlined_call_operand.vmem [shape: bf16[1024,128], index: 5, kind: input, shape index: {}]   ;;  %s6559_s4 = inlined_call_operand.vmem [shape: f32[1,1024], index: 4, kind: input, shape index: {}]   ;;  %s6560_s6 = inlined_call_operand.vmem [shape: f32[1,128], index: 6, kind: input, shape index: {}]   ;;  %s6561_s8 = inlined_call_operand.vmem [shape: f32[1,128], index: 8, kind: input, shape index: {}]   ;;  %s6562_s7 = inlined_call_operand.vmem [shape: bf16[128,128], index: 7, kind: input, shape index: {}]   ;;  %s6563_s9 = inlined_call_operand.vmem [shape: f32[16,128], index: 9, kind: output, shape index: {}]  }
   0x1   :  { %v2917_v0 = vld [vmem:[%s6554_s1] sm:$0xf]  ;;  %v4250_v1 = vld [vmem:[%s6554_s1 + $0xc] sm:$0xf0]  ;;  %v2925_v2 = vld [vmem:[%s6554_s1 + $0x8] sm:$0xf] }
   0x2   :  { %v2918_v3 = vor.u32 %v4250_v1, %v2917_v0  ;;  %v4251_v4 = vld [vmem:[%s6554_s1 + $0x14] sm:$0xf0]  ;;  %v4249_v5 = vld [vmem:[%s6554_s1 + $0xc] sm:$0xf]  ;;  %v2927_v6 = vld [vmem:[%s6554_s1 + $0x18] sm:$0xf0] }
   0x3   :  { %v2926_v7 = vor.u32 %v4251_v4, %v2925_v2  ;;  %v2930_v8 = vor.u32 %v4249_v5, %v2927_v6  ;;  %v4661_v9 = vld [vmem:[%s6555_s0] sm:$0xff]  ;;  %v2919_v11 = vld [vmem:[%s6554_s1 + $0x10] sm:$0xf0] }
   0x4   :  { %v4248_v10 = vld [vmem:[%s6554_s1 + $0x4] sm:$0xf]  ;;  %85 = vmatpush.bf16.msra.mxu1 %v2918_v3  ;;  %v3161_v13 = vld [vmem:[%s6556_s3 + $0x1c0] sm:$0xf] }
   0x5   :  { %v2922_v12 = vor.u32 %v4248_v10, %v2919_v11  ;;  %v4312_v14 = vld [vmem:[%s6556_s3 + $0x1dc] sm:$0xf0]  ;;  %113 = vmatpush.bf16.msra.mxu2 %v2926_v7  ;;  %127 = vmatpush.bf16.msra.mxu3 %v2930_v8 }
   0x6   :  { %v3129_v15 = vld [vmem:[%s6556_s3 + $0x180] sm:$0xf]  ;;  %v3162_v16 = vor.u32 %v4312_v14, %v3161_v13 }
   0x7   :  { %v4304_v17 = vld [vmem:[%s6556_s3 + $0x19c] sm:$0xf0]  ;;  %2931 = vmatmul.msk.bf16.vlgmr.msra.gmra.mxu1 %vm74_vm0, %v4661_v9 }
   0x8   :  { %v3673_v18 = vld [vmem:[%s6556_s3 + $0x5c0] sm:$0xf]  ;;  %99 = vmatpush.bf16.msrb.mxu1 %v2922_v12  ;;  %1700 = vmatpush.bf16.msra.mxu0 %v3162_v16  ;;  %v3130_v23 = vor.u32 %v4304_v17, %v3129_v15 }
   0x9   :  { %v4440_v19 = vld [vmem:[%s6556_s3 + $0x5dc] sm:$0xf0]  ;;  %2933 = vmatmul.msk.bf16.vlgmr.msra.gmra.mxu2 %vm74_vm0, %v4661_v9  ;;  %2934 = vmatmul.msk.bf16.vlgmr.msra.gmra.mxu3 %vm74_vm0, %v4661_v9 }
   0xa   :  { %v3674_v20 = vor.u32 %v4440_v19, %v3673_v18  ;;  %v3929_v21 = vld [vmem:[%s6556_s3 + $0x7c0] sm:$0xf] }
   0xb   :  { %v4504_v22 = vld [vmem:[%s6556_s3 + $0x7dc] sm:$0xf0] }
   0xc   :  { %v3930_v24 = vor.u32 %v4504_v22, %v3929_v21  ;;  %v3097_v25 = vld [vmem:[%s6556_s3 + $0x140] sm:$0xf]  ;;  %1728 = vmatpush.bf16.msrb.mxu2 %v3674_v20  ;;  %1701 = vmatpush.bf16.msra.mxu0 %v3130_v23 }
   0xd   :  { %v3641_v26 = vld [vmem:[%s6556_s3 + $0x580] sm:$0xf] }
   0xe   :  { %v4432_v27 = vld [vmem:[%s6556_s3 + $0x59c] sm:$0xf0]  ;;  %1742 = vmatpush.bf16.msrb.mxu3 %v3930_v24 }
   0xf   :  { %v4296_v28 = vld [vmem:[%s6556_s3 + $0x15c] sm:$0xf0]  ;;  %v3642_v31 = vor.u32 %v4432_v27, %v3641_v26 }
  0x10   :  { %v3897_v29 = vld [vmem:[%s6556_s3 + $0x780] sm:$0xf]  ;;  %v3098_v37 = vor.u32 %v4296_v28, %v3097_v25 }
  0x11   :  { %v4496_v30 = vld [vmem:[%s6556_s3 + $0x79c] sm:$0xf0]  ;;  %1729 = vmatpush.bf16.msrb.mxu2 %v3642_v31 }
  0x12   :  { %v3898_v32 = vor.u32 %v4496_v30, %v3897_v29  ;;  %v3609_v33 = vld [vmem:[%s6556_s3 + $0x540] sm:$0xf]  ;;  %1702 = vmatpush.bf16.msra.mxu0 %v3098_v37  ;;  %v4308_v29 = vld [vmem:[%s6556_s3 + $0x1c4] sm:$0xf] }
  0x13   :  { %v4424_v34 = vld [vmem:[%s6556_s3 + $0x55c] sm:$0xf0]  ;;  %v3163_v30 = vld [vmem:[%s6556_s3 + $0x1e0] sm:$0xf0] }
  0x14   :  { %v3865_v35 = vld [vmem:[%s6556_s3 + $0x740] sm:$0xf]  ;;  %1743 = vmatpush.bf16.msrb.mxu3 %v3898_v32  ;;  %v3610_v43 = vor.u32 %v4424_v34, %v3609_v33  ;;  %v4436_v37 = vld [vmem:[%s6556_s3 + $0x5c4] sm:$0xf] }
  0x15   :  { %v4488_v36 = vld [vmem:[%s6556_s3 + $0x75c] sm:$0xf0] }
  0x16   :  { %v3417_v38 = vld [vmem:[%s6556_s3 + $0x3c0] sm:$0xf]  ;;  %v3866_v44 = vor.u32 %v4488_v36, %v3865_v35  ;;  %1730 = vmatpush.bf16.msrb.mxu2 %v3610_v43  ;;  %v3166_v43 = vor.u32 %v4308_v29, %v3163_v30  ;;  %v4404_v29 = vld [vmem:[%s6556_s3 + $0x4c4] sm:$0xf] }
  0x17   :  { %v4376_v39 = vld [vmem:[%s6556_s3 + $0x3dc] sm:$0xf0]  ;;  %2932 = vmatmul.msk.bf16.vlgmr.msrb.gmra.mxu1 %vm74_vm0, %v4661_v9  ;;  %v3547_v30 = vld [vmem:[%s6556_s3 + $0x4e0] sm:$0xf0] }
  0x18   :  { %v3065_v40 = vld [vmem:[%s6556_s3 + $0x100] sm:$0xf]  ;;  %v3418_v42 = vor.u32 %v4376_v39, %v3417_v38  ;;  %1744 = vmatpush.bf16.msrb.mxu3 %v3866_v44 }
  0x19   :  { %v4288_v41 = vld [vmem:[%s6556_s3 + $0x11c] sm:$0xf0] }
  0x1a   :  { %v3577_v45 = vld [vmem:[%s6556_s3 + $0x500] sm:$0xf]  ;;  %1714 = vmatpush.bf16.msra.mxu1 %v3418_v42  ;;  %v3066_v51 = vor.u32 %v4288_v41, %v3065_v40  ;;  %v3675_v40 = vld [vmem:[%s6556_s3 + $0x5e0] sm:$0xf0] }
  0x1b   :  { %v4416_v46 = vld [vmem:[%s6556_s3 + $0x51c] sm:$0xf0]  ;;  %v4500_v41 = vld [vmem:[%s6556_s3 + $0x7c4] sm:$0xf] }
  0x1c   :  { %v3833_v47 = vld [vmem:[%s6556_s3 + $0x700] sm:$0xf]  ;;  %v3578_v56 = vor.u32 %v4416_v46, %v3577_v45  ;;  %1703 = vmatpush.bf16.msra.mxu0 %v3066_v51  ;;  %v3931_v42 = vld [vmem:[%s6556_s3 + $0x7e0] sm:$0xf0] }
  0x1d   :  { %v4480_v48 = vld [vmem:[%s6556_s3 + $0x71c] sm:$0xf0]  ;;  %v4300_v46 = vld [vmem:[%s6556_s3 + $0x184] sm:$0xf]  ;;  %v3934_v51 = vor.u32 %v4500_v41, %v3931_v42 }
  0x1e   :  { %v3385_v49 = vld [vmem:[%s6556_s3 + $0x380] sm:$0xf]  ;;  %v3834_v57 = vor.u32 %v4480_v48, %v3833_v47  ;;  %1731 = vmatpush.bf16.msrb.mxu2 %v3578_v56  ;;  %v3131_v47 = vld [vmem:[%s6556_s3 + $0x1a0] sm:$0xf0] }
  0x1f   :  { %v4368_v50 = vld [vmem:[%s6556_s3 + $0x39c] sm:$0xf0]  ;;  %v4396_v41 = vld [vmem:[%s6556_s3 + $0x484] sm:$0xf] }
  0x20   :  { %v3386_v52 = vor.u32 %v4368_v50, %v3385_v49  ;;  %v3033_v53 = vld [vmem:[%s6556_s3 + $0xc0] sm:$0xf]  ;;  %1745 = vmatpush.bf16.msrb.mxu3 %v3834_v57  ;;  %v3678_v50 = vor.u32 %v4436_v37, %v3675_v40  ;;  %v3134_v57 = vor.u32 %v4300_v46, %v3131_v47  ;;  %v4356_v37 = vld [vmem:[%s6556_s3 + $0x344] sm:$0xf] }
  0x21   :  { %v4280_v54 = vld [vmem:[%s6556_s3 + $0xdc] sm:$0xf0]  ;;  %v3515_v42 = vld [vmem:[%s6556_s3 + $0x4a0] sm:$0xf0] }
  0x22   :  { %v3353_v55 = vld [vmem:[%s6556_s3 + $0x340] sm:$0xf]  ;;  %1715 = vmatpush.bf16.msra.mxu1 %v3386_v52  ;;  %v3034_v0 = vor.u32 %v4280_v54, %v3033_v53  ;;  %v4428_v52 = vld [vmem:[%s6556_s3 + $0x584] sm:$0xf] }
  0x23   :  { %v3545_v58 = vld [vmem:[%s6556_s3 + $0x4c0] sm:$0xf]  ;;  %v3643_v53 = vld [vmem:[%s6556_s3 + $0x5a0] sm:$0xf0] }
  0x24   :  { %v4360_v59 = vld [vmem:[%s6556_s3 + $0x35c] sm:$0xf0]  ;;  %1704 = vmatpush.bf16.msra.mxu0 %v3034_v0  ;;  %v4492_v54 = vld [vmem:[%s6556_s3 + $0x784] sm:$0xf] }
  0x25   :  { %v4408_v60 = vld [vmem:[%s6556_s3 + $0x4dc] sm:$0xf0]  ;;  %v3354_v63 = vor.u32 %v4360_v59, %v3353_v55  ;;  %v3899_v55 = vld [vmem:[%s6556_s3 + $0x7a0] sm:$0xf0] }
  0x26   :  { %v3801_v61 = vld [vmem:[%s6556_s3 + $0x6c0] sm:$0xf]  ;;  %v3546_v5 = vor.u32 %v4408_v60, %v3545_v58  ;;  %v4292_v58 = vld [vmem:[%s6556_s3 + $0x144] sm:$0xf]  ;;  %v3646_v60 = vor.u32 %v4428_v52, %v3643_v53 }
  0x27   :  { %v4472_v62 = vld [vmem:[%s6556_s3 + $0x6dc] sm:$0xf0]  ;;  %1716 = vmatpush.bf16.msra.mxu1 %v3354_v63  ;;  %v3099_v59 = vld [vmem:[%s6556_s3 + $0x160] sm:$0xf0] }
  0x28   :  { %v3321_v1 = vld [vmem:[%s6556_s3 + $0x300] sm:$0xf]  ;;  %v3802_v6 = vor.u32 %v4472_v62, %v3801_v61  ;;  %1732 = vmatpush.bf16.msrb.mxu2 %v3546_v5  ;;  %v3902_v61 = vor.u32 %v4492_v54, %v3899_v55  ;;  %v3102_v62 = vor.u32 %v4292_v58, %v3099_v59  ;;  %v4284_v63 = vld [vmem:[%s6556_s3 + $0x104] sm:$0xf] }
  0x29   :  { %v4352_v2 = vld [vmem:[%s6556_s3 + $0x31c] sm:$0xf0]  ;;  %v3067_v0 = vld [vmem:[%s6556_s3 + $0x120] sm:$0xf0] }
  0x2a   :  { %v3001_v3 = vld [vmem:[%s6556_s3 + $0x80] sm:$0xf]  ;;  %v3322_v12 = vor.u32 %v4352_v2, %v3321_v1  ;;  %1746 = vmatpush.bf16.msrb.mxu3 %v3802_v6  ;;  %v3070_v1 = vor.u32 %v4284_v63, %v3067_v0  ;;  %v4420_v2 = vld [vmem:[%s6556_s3 + $0x544] sm:$0xf] }
  0x2b   :  { %v4272_v4 = vld [vmem:[%s6556_s3 + $0x9c] sm:$0xf0]  ;;  %v3867_v6 = vld [vmem:[%s6556_s3 + $0x760] sm:$0xf0] }
  0x2c   :  { %v3513_v7 = vld [vmem:[%s6556_s3 + $0x480] sm:$0xf]  ;;  %v3002_v13 = vor.u32 %v4272_v4, %v3001_v3  ;;  %1717 = vmatpush.bf16.msra.mxu1 %v3322_v12  ;;  %v3611_v3 = vld [vmem:[%s6556_s3 + $0x560] sm:$0xf0] }
  0x2d   :  { %v4400_v8 = vld [vmem:[%s6556_s3 + $0x49c] sm:$0xf0]  ;;  %v4484_v4 = vld [vmem:[%s6556_s3 + $0x744] sm:$0xf]  ;;  %v3614_v5 = vor.u32 %v4420_v2, %v3611_v3 }
  0x2e   :  { %v3769_v10 = vld [vmem:[%s6556_s3 + $0x680] sm:$0xf]  ;;  %v3514_v9 = vor.u32 %v4400_v8, %v3513_v7  ;;  %1705 = vmatpush.bf16.msra.mxu0 %v3002_v13  ;;  %v4276_v12 = vld [vmem:[%s6556_s3 + $0xc4] sm:$0xf] }
  0x2f   :  { %v4464_v11 = vld [vmem:[%s6556_s3 + $0x69c] sm:$0xf0]  ;;  %v3035_v13 = vld [vmem:[%s6556_s3 + $0xe0] sm:$0xf0] }
  0x30   :  { %v3289_v14 = vld [vmem:[%s6556_s3 + $0x2c0] sm:$0xf]  ;;  %v3770_v18 = vor.u32 %v4464_v11, %v3769_v10  ;;  %1733 = vmatpush.bf16.msrb.mxu2 %v3514_v9  ;;  %v3870_v10 = vor.u32 %v4484_v4, %v3867_v6  ;;  %v4412_v9 = vld [vmem:[%s6556_s3 + $0x504] sm:$0xf] }
  0x31   :  { %v4344_v15 = vld [vmem:[%s6556_s3 + $0x2dc] sm:$0xf0]  ;;  %v4252_v47 = vld [vmem:[%s6556_s3 + $0x4] sm:$0xf] }
  0x32   :  { %v2969_v16 = vld [vmem:[%s6556_s3 + $0x40] sm:$0xf]  ;;  %v3290_v23 = vor.u32 %v4344_v15, %v3289_v14  ;;  %1747 = vmatpush.bf16.msrb.mxu3 %v3770_v18  ;;  %v4372_v14 = vld [vmem:[%s6556_s3 + $0x3c4] sm:$0xf]  ;;  %v3038_v15 = vor.u32 %v4276_v12, %v3035_v13 }
  0x33   :  { %v4264_v17 = vld [vmem:[%s6556_s3 + $0x5c] sm:$0xf0]  ;;  %v3579_v18 = vld [vmem:[%s6556_s3 + $0x520] sm:$0xf0] }
  0x34   :  { %v3481_v19 = vld [vmem:[%s6556_s3 + $0x440] sm:$0xf]  ;;  %v2970_v24 = vor.u32 %v4264_v17, %v2969_v16  ;;  %1718 = vmatpush.bf16.msra.mxu1 %v3290_v23  ;;  %v3419_v16 = vld [vmem:[%s6556_s3 + $0x3e0] sm:$0xf0] }
  0x35   :  { %v4392_v20 = vld [vmem:[%s6556_s3 + $0x45c] sm:$0xf0]  ;;  %v3422_v17 = vor.u32 %v4372_v14, %v3419_v16  ;;  %v4268_v23 = vld [vmem:[%s6556_s3 + $0x84] sm:$0xf] }
  0x36   :  { %v3737_v21 = vld [vmem:[%s6556_s3 + $0x640] sm:$0xf]  ;;  %v3482_v31 = vor.u32 %v4392_v20, %v3481_v19  ;;  %1706 = vmatpush.bf16.msra.mxu0 %v2970_v24  ;;  %v4476_v19 = vld [vmem:[%s6556_s3 + $0x704] sm:$0xf]  ;;  %v3582_v20 = vor.u32 %v4412_v9, %v3579_v18 }
  0x37   :  { %v4456_v22 = vld [vmem:[%s6556_s3 + $0x65c] sm:$0xf0]  ;;  %v3003_v24 = vld [vmem:[%s6556_s3 + $0xa0] sm:$0xf0] }
  0x38   :  { %v3257_v25 = vld [vmem:[%s6556_s3 + $0x280] sm:$0xf]  ;;  %v3738_v32 = vor.u32 %v4456_v22, %v3737_v21  ;;  %1734 = vmatpush.bf16.msrb.mxu2 %v3482_v31  ;;  %v3835_v21 = vld [vmem:[%s6556_s3 + $0x720] sm:$0xf0] }
  0x39   :  { %v4336_v26 = vld [vmem:[%s6556_s3 + $0x29c] sm:$0xf0]  ;;  %v3838_v22 = vor.u32 %v4476_v19, %v3835_v21  ;;  %v4468_v31 = vld [vmem:[%s6556_s3 + $0x6c4] sm:$0xf] }
  0x3a   :  { %v2937_v27 = vld [vmem:[%s6556_s3] sm:$0xf]  ;;  %v3258_v38 = vor.u32 %v4336_v26, %v3257_v25  ;;  %1748 = vmatpush.bf16.msrb.mxu3 %v3738_v32  ;;  %v4364_v25 = vld [vmem:[%s6556_s3 + $0x384] sm:$0xf]  ;;  %v3006_v26 = vor.u32 %v4268_v23, %v3003_v24  ;;  %v3550_v32 = vor.u32 %v4404_v29, %v3547_v30  ;;  %v4313_v23 = vld [vmem:[%s6556_s3 + $0x1e4] sm:$0xf0] }
  0x3b   :  { %v4256_v28 = vld [vmem:[%s6556_s3 + $0x1c] sm:$0xf0]  ;;  %v4388_v53 = vld [vmem:[%s6556_s3 + $0x444] sm:$0xf]  ;;  %v3137_v30 = vld [vmem:[%s6556_s3 + $0x188] sm:$0xf] }
  0x3c   :  { %v3449_v33 = vld [vmem:[%s6556_s3 + $0x400] sm:$0xf]  ;;  %v2938_v39 = vor.u32 %v4256_v28, %v2937_v27  ;;  %1719 = vmatpush.bf16.msra.mxu1 %v3258_v38  ;;  %v3387_v27 = vld [vmem:[%s6556_s3 + $0x3a0] sm:$0xf0] }
  0x3d   :  { %v4384_v34 = vld [vmem:[%s6556_s3 + $0x41c] sm:$0xf0]  ;;  %v3390_v28 = vor.u32 %v4364_v25, %v3387_v27  ;;  %v3483_v54 = vld [vmem:[%s6556_s3 + $0x460] sm:$0xf0] }
  0x3e   :  { %v3705_v35 = vld [vmem:[%s6556_s3 + $0x600] sm:$0xf]  ;;  %v3450_v48 = vor.u32 %v4384_v34, %v3449_v33  ;;  %1707 = vmatpush.bf16.msra.mxu0 %v2938_v39  ;;  %v3803_v33 = vld [vmem:[%s6556_s3 + $0x6e0] sm:$0xf0] }
  0x3f   :  { %v4448_v36 = vld [vmem:[%s6556_s3 + $0x61c] sm:$0xf0]  ;;  %v3806_v34 = vor.u32 %v4468_v31, %v3803_v33  ;;  %v3355_v39 = vld [vmem:[%s6556_s3 + $0x360] sm:$0xf0]  ;;  %v4305_v31 = vld [vmem:[%s6556_s3 + $0x1a4] sm:$0xf0] }
  0x40   :  { %v3225_v44 = vld [vmem:[%s6556_s3 + $0x240] sm:$0xf]  ;;  %v3706_v49 = vor.u32 %v4448_v36, %v3705_v35  ;;  %1735 = vmatpush.bf16.msrb.mxu2 %v3450_v48  ;;  %v4260_v35 = vld [vmem:[%s6556_s3 + $0x44] sm:$0xf]  ;;  %v3358_v40 = vor.u32 %v4356_v37, %v3355_v39 }
  0x41   :  { %v4328_v45 = vld [vmem:[%s6556_s3 + $0x25c] sm:$0xf0]  ;;  %v2971_v36 = vld [vmem:[%s6556_s3 + $0x60] sm:$0xf0] }
  0x42   :  { %v3226_v56 = vor.u32 %v4328_v45, %v3225_v44  ;;  %1756 = vmatpush.bf16.msrb.mxu0 %v3166_v43  ;;  %1749 = vmatpush.bf16.msrb.mxu3 %v3706_v49  ;;  %v3193_v7 = vld [vmem:[%s6556_s3 + $0x200] sm:$0xf]  ;;  %v2974_v38 = vor.u32 %v4260_v35, %v2971_v36  ;;  %v3518_v43 = vor.u32 %v4396_v41, %v3515_v42  ;;  %v4460_v44 = vld [vmem:[%s6556_s3 + $0x684] sm:$0xf]  ;;  %v3681_v35 = vld [vmem:[%s6556_s3 + $0x5c8] sm:$0xf] }
  0x43   :  { %v4320_v8 = vld [vmem:[%s6556_s3 + $0x21c] sm:$0xf0]  ;;  %v3771_v45 = vld [vmem:[%s6556_s3 + $0x6a0] sm:$0xf0]  ;;  %v4441_v36 = vld [vmem:[%s6556_s3 + $0x5e4] sm:$0xf0]  ;;  %v3138_v41 = vor.u32 %v4305_v31, %v3137_v30 }
  0x44   :  { %1784 = vmatpush.bf16.msra.mxu2 %v3678_v50  ;;  %1720 = vmatpush.bf16.msra.mxu1 %v3226_v56  ;;  %v3194_v11 = vor.u32 %v4320_v8, %v3193_v7  ;;  %v3774_v46 = vor.u32 %v4460_v44, %v3771_v45  ;;  %v2939_v48 = vld [vmem:[%s6556_s3 + $0x20] sm:$0xf0]  ;;  %v3486_v56 = vor.u32 %v4388_v53, %v3483_v54  ;;  %v5064_v14 = vld [vmem:[%s6557_s2] sm:$0xf]  ;;  %v3937_v42 = vld [vmem:[%s6556_s3 + $0x7c8] sm:$0xf] }
  0x45   :  { %v4348_v49 = vld [vmem:[%s6556_s3 + $0x304] sm:$0xf]  ;;  %v2942_v50 = vor.u32 %v4252_v47, %v2939_v48  ;;  %v41_v16 = vperm.slane %v5064_v14, 0  ;;  %v44_v19 = vperm.slane %v5064_v14, 3  ;;  %v43_v24 = vperm.slane %v5064_v14, 2 }
  0x46   :  { %1798 = vmatpush.bf16.msra.mxu3 %v3934_v51  ;;  %1757 = vmatpush.bf16.msrb.mxu0 %v3134_v57  ;;  %v3323_v51 = vld [vmem:[%s6556_s3 + $0x320] sm:$0xf0]  ;;  %v3105_v44 = vld [vmem:[%s6556_s3 + $0x148] sm:$0xf] }
  0x47   :  { %v3326_v52 = vor.u32 %v4348_v49, %v3323_v51  ;;  %v4452_v55 = vld [vmem:[%s6556_s3 + $0x644] sm:$0xf]  ;;  %v4297_v45 = vld [vmem:[%s6556_s3 + $0x164] sm:$0xf0]  ;;  %v42_v49 = vperm.slane %v5064_v14, 1 }
  0x48   :  { %1785 = vmatpush.bf16.msra.mxu2 %v3646_v60  ;;  %1721 = vmatpush.bf16.msra.mxu1 %v3194_v11  ;;  %v3739_v57 = vld [vmem:[%s6556_s3 + $0x660] sm:$0xf0]  ;;  %v4409_v30 = vld [vmem:[%s6556_s3 + $0x4e4] sm:$0xf0] }
  0x49   :  { %v3742_v58 = vor.u32 %v4452_v55, %v3739_v57  ;;  %v4340_v59 = vld [vmem:[%s6556_s3 + $0x2c4] sm:$0xf]  ;;  %v3106_v55 = vor.u32 %v4297_v45, %v3105_v44  ;;  %v3905_v57 = vld [vmem:[%s6556_s3 + $0x788] sm:$0xf] }
  0x4a   :  { %1799 = vmatpush.bf16.msra.mxu3 %v3902_v61  ;;  %1758 = vmatpush.bf16.msrb.mxu0 %v3102_v62  ;;  %v3291_v60 = vld [vmem:[%s6556_s3 + $0x2e0] sm:$0xf0]  ;;  %v3809_v31 = vld [vmem:[%s6556_s3 + $0x6c8] sm:$0xf] }
  0x4b   :  { %v3294_v61 = vor.u32 %v4340_v59, %v3291_v60  ;;  %v4380_v62 = vld [vmem:[%s6556_s3 + $0x404] sm:$0xf]  ;;  %v3073_v59 = vld [vmem:[%s6556_s3 + $0x108] sm:$0xf] }
  0x4c   :  { %1786 = vmatpush.bf16.msra.mxu2 %v3614_v5  ;;  %1770 = vmatpush.bf16.msrb.mxu1 %v3422_v17  ;;  %v3451_v63 = vld [vmem:[%s6556_s3 + $0x420] sm:$0xf0]  ;;  %v4289_v60 = vld [vmem:[%s6556_s3 + $0x124] sm:$0xf0] }
  0x4d   :  { %v4444_v0 = vld [vmem:[%s6556_s3 + $0x604] sm:$0xf]  ;;  %v4465_v44 = vld [vmem:[%s6556_s3 + $0x6a4] sm:$0xf0] }
  0x4e   :  { %1759 = vmatpush.bf16.msrb.mxu0 %v3070_v1  ;;  %1800 = vmatpush.bf16.msra.mxu3 %v3870_v10  ;;  %v3454_v1 = vor.u32 %v4380_v62, %v3451_v63  ;;  %v3707_v2 = vld [vmem:[%s6556_s3 + $0x620] sm:$0xf0] }
  0x4f   :  { %v3710_v3 = vor.u32 %v4444_v0, %v3707_v2  ;;  %v4332_v4 = vld [vmem:[%s6556_s3 + $0x284] sm:$0xf]  ;;  %v3617_v0 = vld [vmem:[%s6556_s3 + $0x548] sm:$0xf]  ;;  %v3074_v2 = vor.u32 %v4289_v60, %v3073_v59 }
  0x50   :  { %1787 = vmatpush.bf16.msra.mxu2 %v3582_v20  ;;  %1771 = vmatpush.bf16.msrb.mxu1 %v3390_v28  ;;  %v3259_v5 = vld [vmem:[%s6556_s3 + $0x2a0] sm:$0xf0]  ;;  %v3745_v59 = vld [vmem:[%s6556_s3 + $0x648] sm:$0xf] }
  0x51   :  { %v3262_v6 = vor.u32 %v4332_v4, %v3259_v5  ;;  %v4324_v7 = vld [vmem:[%s6556_s3 + $0x244] sm:$0xf]  ;;  %v3873_v4 = vld [vmem:[%s6556_s3 + $0x748] sm:$0xf] }
  0x52   :  { %1760 = vmatpush.bf16.msrb.mxu0 %v3038_v15  ;;  %1801 = vmatpush.bf16.msra.mxu3 %v3838_v22  ;;  %v3227_v8 = vld [vmem:[%s6556_s3 + $0x260] sm:$0xf0]  ;;  %v3169_v22 = vld [vmem:[%s6556_s3 + $0x1c8] sm:$0xf] }
  0x53   :  { %v3230_v10 = vor.u32 %v4324_v7, %v3227_v8  ;;  %v4316_v11 = vld [vmem:[%s6556_s3 + $0x204] sm:$0xf]  ;;  %v3170_v28 = vor.u32 %v4313_v23, %v3169_v22  ;;  %v4489_v5 = vld [vmem:[%s6556_s3 + $0x764] sm:$0xf0] }
  0x54   :  { %1788 = vmatpush.bf16.msra.mxu2 %v3550_v32  ;;  %1772 = vmatpush.bf16.msrb.mxu1 %v3358_v40  ;;  %v3195_v12 = vld [vmem:[%s6556_s3 + $0x220] sm:$0xf0]  ;;  %v3041_v7 = vld [vmem:[%s6556_s3 + $0xc8] sm:$0xf] }
  0x55   :  { %v3198_v13 = vor.u32 %v4316_v11, %v3195_v12  ;;  %v4281_v8 = vld [vmem:[%s6556_s3 + $0xe4] sm:$0xf0] }
  0x56   :  { %1761 = vmatpush.bf16.msrb.mxu0 %v3006_v26  ;;  %1802 = vmatpush.bf16.msra.mxu3 %v3806_v34  ;;  %v4377_v11 = vld [vmem:[%s6556_s3 + $0x3e4] sm:$0xf0] }
  0x57   :  { %v3009_v22 = vld [vmem:[%s6556_s3 + $0x88] sm:$0xf] }
  0x58   :  { %1789 = vmatpush.bf16.msra.mxu2 %v3518_v43  ;;  %1773 = vmatpush.bf16.msrb.mxu1 %v3326_v52  ;;  %v4505_v43 = vld [vmem:[%s6556_s3 + $0x7e4] sm:$0xf0] }
  0x59   :  { %v3938_v51 = vor.u32 %v4505_v43, %v3937_v42  ;;  %v3649_v52 = vld [vmem:[%s6556_s3 + $0x588] sm:$0xf] }
  0x5a   :  { %1762 = vmatpush.bf16.msrb.mxu0 %v2974_v38  ;;  %1803 = vmatpush.bf16.msra.mxu3 %v3774_v46  ;;  %v4273_v23 = vld [vmem:[%s6556_s3 + $0xa4] sm:$0xf0] }
  0x5b   :  { %v4401_v42 = vld [vmem:[%s6556_s3 + $0x4a4] sm:$0xf0] }
  0x5c   :  { %1790 = vmatpush.bf16.msra.mxu2 %v3486_v56  ;;  %1774 = vmatpush.bf16.msrb.mxu1 %v3294_v61  ;;  %v4433_v56 = vld [vmem:[%s6556_s3 + $0x5a4] sm:$0xf0] }
  0x5d   :  { %v3650_v62 = vor.u32 %v4433_v56, %v3649_v52  ;;  %v3777_v43 = vld [vmem:[%s6556_s3 + $0x688] sm:$0xf]  ;;  %v3171_v56 = vld [vmem:[%s6556_s3 + $0x1e8] sm:$0xf0] }
  0x5e   :  { %1763 = vmatpush.bf16.msrb.mxu0 %v2942_v50  ;;  %1804 = vmatpush.bf16.msra.mxu3 %v3742_v58  ;;  %v3682_v50 = vor.u32 %v4441_v36, %v3681_v35  ;;  %v4497_v58 = vld [vmem:[%s6556_s3 + $0x7a4] sm:$0xf0]  ;;  %v3778_v52 = vor.u32 %v4465_v44, %v3777_v43 }
  0x5f   :  { %v3906_v63 = vor.u32 %v4497_v58, %v3905_v57  ;;  %v2977_v35 = vld [vmem:[%s6556_s3 + $0x48] sm:$0xf] }
  0x60   :  { %1791 = vmatpush.bf16.msra.mxu2 %v3454_v1  ;;  %1775 = vmatpush.bf16.msrb.mxu1 %v3262_v6  ;;  %v4265_v36 = vld [vmem:[%s6556_s3 + $0x64] sm:$0xf0] }
  0x61   :  { %v2978_v45 = vor.u32 %v4265_v36, %v2977_v35  ;;  %v3489_v57 = vld [vmem:[%s6556_s3 + $0x448] sm:$0xf]  ;;  %v3075_v35 = vld [vmem:[%s6556_s3 + $0x128] sm:$0xf0] }
  0x62   :  { %1805 = vmatpush.bf16.msra.mxu3 %v3710_v3  ;;  %v4425_v3 = vld [vmem:[%s6556_s3 + $0x564] sm:$0xf0] }
  0x63   :  { %v3618_v14 = vor.u32 %v4425_v3, %v3617_v0  ;;  %v4393_v58 = vld [vmem:[%s6556_s3 + $0x464] sm:$0xf0] }
  0x64   :  { %1776 = vmatpush.bf16.msrb.mxu1 %v3230_v10  ;;  %v3425_v10 = vld [vmem:[%s6556_s3 + $0x3c8] sm:$0xf]  ;;  %v3490_v3 = vor.u32 %v4393_v58, %v3489_v57  ;;  %v4477_v57 = vld [vmem:[%s6556_s3 + $0x70c] sm:$0xf] }
  0x65   :  { %v4457_v60 = vld [vmem:[%s6556_s3 + $0x664] sm:$0xf0]  ;;  %v3843_v58 = vld [vmem:[%s6556_s3 + $0x728] sm:$0xf0] }
  0x66   :  { %v3297_v0 = vld [vmem:[%s6556_s3 + $0x2c8] sm:$0xf] }
  0x67   :  { %v3201_v44 = vld [vmem:[%s6556_s3 + $0x208] sm:$0xf] }
  0x68   :  { %1777 = vmatpush.bf16.msrb.mxu1 %v3198_v13 }
  0x84   :  { %v87_v15 = vpop.f32.mrf.mxu1 }
  0x85   :  { %v88_v17 = vadd.f32 %v87_v15, %v41_v16  ;;  %v3874_v15 = vor.u32 %v4489_v5, %v3873_v4  ;;  %v3746_v4 = vor.u32 %v4457_v60, %v3745_v59  ;;  %v3139_v5 = vld [vmem:[%s6556_s3 + $0x1a8] sm:$0xf0] }
  0x87   :  { %v134_v25 = vmax.f32 %v88_v17, 0.0  ;;  %v4417_v17 = vld [vmem:[%s6556_s3 + $0x524] sm:$0xf0] }
  0x8c   :  { %v115_v9 = vpop.f32.mrf.mxu2  ;;  %v129_v18 = vpop.f32.mrf.mxu3 }
  0x8d   :  { %v89_v20 = vpop.f32.mrf.mxu1  ;;  %v130_v27 = vadd.f32 %v129_v18, %v44_v19  ;;  %v116_v32 = vadd.f32 %v115_v9, %v43_v24  ;;  %v3841_v9 = vld [vmem:[%s6556_s3 + $0x708] sm:$0xf] }
  0x8e   :  { %v90_v21 = vadd.f32 %v89_v20, %v41_v16  ;;  %v3585_v16 = vld [vmem:[%s6556_s3 + $0x508] sm:$0xf]  ;;  %v3042_v20 = vor.u32 %v4281_v8, %v3041_v7 }
  0x8f   :  { %v137_v37 = vmax.f32 %v130_v27, 0.0  ;;  %v136_v46 = vmax.f32 %v116_v32, 0.0  ;;  %v4481_v18 = vld [vmem:[%s6556_s3 + $0x724] sm:$0xf0] }
  0x90   :  { %v138_v26 = vmax.f32 %v90_v21, 0.0  ;;  %v3426_v21 = vor.u32 %v4377_v11, %v3425_v10  ;;  %v3842_v27 = vor.u32 %v4481_v18, %v3841_v9  ;;  %v4473_v32 = vld [vmem:[%s6556_s3 + $0x6e4] sm:$0xf0]  ;;  %v4437_v11 = vld [vmem:[%s6556_s3 + $0x5cc] sm:$0xf] }
  0x91   :  { %v4385_v7 = vld [vmem:[%s6556_s3 + $0x424] sm:$0xf0] }
  0x92   :  { %v5075_v29 = vpack.c.bf16 %v138_v26, %v134_v25  ;;  %v4369_v25 = vld [vmem:[%s6556_s3 + $0x3a4] sm:$0xf0]  ;;  %v3586_v26 = vor.u32 %v4417_v17, %v3585_v16 }
  0x93   :  { %v3713_v8 = vld [vmem:[%s6556_s3 + $0x608] sm:$0xf] }
  0x94   :  { %v117_v33 = vpop.f32.mrf.mxu2  ;;  %v131_v34 = vpop.f32.mrf.mxu3  ;;  %1708 = vmatmul.bf16.vlgmr.msra.gmra.mxu0 %v5075_v29  ;;  %v4449_v10 = vld [vmem:[%s6556_s3 + $0x624] sm:$0xf0] }
  0x95   :  { %v118_v38 = vadd.f32 %v117_v33, %v43_v24  ;;  %v132_v39 = vadd.f32 %v131_v34, %v44_v19  ;;  %1812 = vmatpush.bf16.msra.mxu0 %v3170_v28  ;;  %v101_v40 = vpop.f32.mrf.mxu1  ;;  %v3393_v24 = vld [vmem:[%s6556_s3 + $0x388] sm:$0xf]  ;;  %v3010_v33 = vor.u32 %v4273_v23, %v3009_v22  ;;  %v3107_v22 = vld [vmem:[%s6556_s3 + $0x168] sm:$0xf0] }
  0x96   :  { %v102_v61 = vadd.f32 %v101_v40, %v42_v49  ;;  %v3553_v28 = vld [vmem:[%s6556_s3 + $0x4c8] sm:$0xf]  ;;  %v3394_v34 = vor.u32 %v4369_v25, %v3393_v24  ;;  %v3810_v40 = vor.u32 %v4473_v32, %v3809_v31  ;;  %v4429_v25 = vld [vmem:[%s6556_s3 + $0x58c] sm:$0xf] }
  0x97   :  { %v140_v47 = vmax.f32 %v118_v38, 0.0  ;;  %v141_v48 = vmax.f32 %v132_v39, 0.0  ;;  %v4361_v38 = vld [vmem:[%s6556_s3 + $0x364] sm:$0xf0]  ;;  %v3554_v39 = vor.u32 %v4409_v30, %v3553_v28  ;;  %v4493_v28 = vld [vmem:[%s6556_s3 + $0x78c] sm:$0xf] }
  0x98   :  { %v135_v12 = vmax.f32 %v102_v61, 0.0  ;;  %v3265_v17 = vld [vmem:[%s6556_s3 + $0x288] sm:$0xf]  ;;  %v3907_v30 = vld [vmem:[%s6556_s3 + $0x7a8] sm:$0xf0] }
  0x99   :  { %v5106_v53 = vpack.c.bf16 %v140_v47, %v136_v46  ;;  %v5108_v54 = vpack.c.bf16 %v141_v48, %v137_v37  ;;  %1813 = vmatpush.bf16.msra.mxu0 %v3138_v41  ;;  %v3361_v37 = vld [vmem:[%s6556_s3 + $0x348] sm:$0xf] }
  0x9a   :  { %v3521_v41 = vld [vmem:[%s6556_s3 + $0x488] sm:$0xf]  ;;  %v3362_v46 = vor.u32 %v4361_v38, %v3361_v37  ;;  %v3910_v37 = vor.u32 %v4493_v28, %v3907_v30  ;;  %v4421_v38 = vld [vmem:[%s6556_s3 + $0x54c] sm:$0xf]  ;;  %v3177_v28 = vld [vmem:[%s6556_s3 + $0x1d0] sm:$0xf] }
  0x9b   :  { %1736 = vmatmul.bf16.vlgmr.msrb.gmra.mxu2 %v5106_v53  ;;  %1750 = vmatmul.bf16.vlgmr.msrb.gmra.mxu3 %v5108_v54  ;;  %v2945_v47 = vld [vmem:[%s6556_s3 + $0x8] sm:$0xf]  ;;  %v4314_v30 = vld [vmem:[%s6556_s3 + $0x1ec] sm:$0xf0] }
  0x9c   :  { %1840 = vmatpush.bf16.msrb.mxu2 %v3682_v50  ;;  %1854 = vmatpush.bf16.msrb.mxu3 %v3938_v51  ;;  %v4257_v48 = vld [vmem:[%s6556_s3 + $0x24] sm:$0xf0]  ;;  %v3522_v51 = vor.u32 %v4401_v42, %v3521_v41  ;;  %v4485_v41 = vld [vmem:[%s6556_s3 + $0x74c] sm:$0xf] }
  0x9d   :  { %1814 = vmatpush.bf16.msra.mxu0 %v3106_v55  ;;  %v103_v1 = vpop.f32.mrf.mxu1  ;;  %v4353_v50 = vld [vmem:[%s6556_s3 + $0x324] sm:$0xf0]  ;;  %v4309_v55 = vld [vmem:[%s6556_s3 + $0x1cc] sm:$0xf]  ;;  %v2946_v61 = vor.u32 %v4257_v48, %v2945_v47 }
  0x9e   :  { %v104_v6 = vadd.f32 %v103_v1, %v42_v49  ;;  %v3329_v49 = vld [vmem:[%s6556_s3 + $0x308] sm:$0xf]  ;;  %v3875_v42 = vld [vmem:[%s6556_s3 + $0x768] sm:$0xf0] }
  0x9f   :  { %v4345_v1 = vld [vmem:[%s6556_s3 + $0x2e4] sm:$0xf0]  ;;  %v3043_v47 = vld [vmem:[%s6556_s3 + $0xe8] sm:$0xf0] }
  0xa0   :  { %v139_v13 = vmax.f32 %v104_v6, 0.0  ;;  %1841 = vmatpush.bf16.msrb.mxu2 %v3650_v62  ;;  %1855 = vmatpush.bf16.msrb.mxu3 %v3906_v63  ;;  %v3330_v62 = vor.u32 %v4353_v50, %v3329_v49  ;;  %v3174_v63 = vor.u32 %v4309_v55, %v3171_v56  ;;  %v3457_v6 = vld [vmem:[%s6556_s3 + $0x408] sm:$0xf]  ;;  %v4373_v48 = vld [vmem:[%s6556_s3 + $0x3cc] sm:$0xf] }
  0xa1   :  { %1815 = vmatpush.bf16.msra.mxu0 %v3074_v2  ;;  %v4301_v2 = vld [vmem:[%s6556_s3 + $0x18c] sm:$0xf]  ;;  %v4337_v9 = vld [vmem:[%s6556_s3 + $0x2a4] sm:$0xf0]  ;;  %v3458_v18 = vor.u32 %v4385_v7, %v3457_v6 }
  0xa2   :  { %v5163_v19 = vpack.c.bf16 %v139_v13, %v135_v12  ;;  %v3298_v12 = vor.u32 %v4345_v1, %v3297_v0  ;;  %v3683_v13 = vld [vmem:[%s6556_s3 + $0x5e8] sm:$0xf0]  ;;  %v3142_v16 = vor.u32 %v4301_v2, %v3139_v5  ;;  %v3233_v32 = vld [vmem:[%s6556_s3 + $0x248] sm:$0xf]  ;;  %v3846_v2 = vor.u32 %v4477_v57, %v3843_v58 }
  0xa3   :  { %v3686_v23 = vor.u32 %v4437_v11, %v3683_v13  ;;  %v3427_v49 = vld [vmem:[%s6556_s3 + $0x3e8] sm:$0xf0] }
  0xa4   :  { %1842 = vmatpush.bf16.msrb.mxu2 %v3618_v14  ;;  %1856 = vmatpush.bf16.msrb.mxu3 %v3874_v15  ;;  %v4501_v14 = vld [vmem:[%s6556_s3 + $0x7cc] sm:$0xf]  ;;  %v3430_v60 = vor.u32 %v4373_v48, %v3427_v49  ;;  %v3689_v48 = vld [vmem:[%s6556_s3 + $0x5d0] sm:$0xf] }
  0xa5   :  { %1722 = vmatmul.bf16.vlgmr.msra.gmra.mxu1 %v5163_v19  ;;  %1764 = vmatmul.bf16.vlgmr.msrb.gmra.mxu0 %v5075_v29  ;;  %v3939_v15 = vld [vmem:[%s6556_s3 + $0x7e8] sm:$0xf0] }
  0xa6   :  { %1816 = vmatpush.bf16.msra.mxu0 %v3042_v20  ;;  %1826 = vmatpush.bf16.msra.mxu1 %v3426_v21  ;;  %v3714_v20 = vor.u32 %v4449_v10, %v3713_v8  ;;  %v4293_v21 = vld [vmem:[%s6556_s3 + $0x14c] sm:$0xf]  ;;  %v3942_v24 = vor.u32 %v4501_v14, %v3939_v15 }
  0xa7   :  { %v3110_v31 = vor.u32 %v4293_v21, %v3107_v22  ;;  %v3587_v56 = vld [vmem:[%s6556_s3 + $0x528] sm:$0xf0] }
  0xa8   :  { %1843 = vmatpush.bf16.msrb.mxu2 %v3586_v26  ;;  %1857 = vmatpush.bf16.msrb.mxu3 %v3842_v27  ;;  %v3266_v26 = vor.u32 %v4337_v9, %v3265_v17  ;;  %v3651_v27 = vld [vmem:[%s6556_s3 + $0x5a8] sm:$0xf0] }
  0xa9   :  { %v3654_v36 = vor.u32 %v4429_v25, %v3651_v27  ;;  %v3395_v0 = vld [vmem:[%s6556_s3 + $0x3a8] sm:$0xf0] }
  0xaa   :  { %1817 = vmatpush.bf16.msra.mxu0 %v3010_v33  ;;  %1827 = vmatpush.bf16.msra.mxu1 %v3394_v34  ;;  %v4329_v33 = vld [vmem:[%s6556_s3 + $0x264] sm:$0xf0]  ;;  %v4285_v34 = vld [vmem:[%s6556_s3 + $0x10c] sm:$0xf] }
  0xab   :  { %1792 = vmatmul.bf16.vlgmr.msra.gmra.mxu2 %v5106_v53  ;;  %1806 = vmatmul.bf16.vlgmr.msra.gmra.mxu3 %v5108_v54  ;;  %v3078_v43 = vor.u32 %v4285_v34, %v3075_v35  ;;  %v4469_v5 = vld [vmem:[%s6556_s3 + $0x6cc] sm:$0xf] }
  0xac   :  { %1844 = vmatpush.bf16.msrb.mxu2 %v3554_v39  ;;  %1858 = vmatpush.bf16.msrb.mxu3 %v3810_v40  ;;  %v3234_v39 = vor.u32 %v4329_v33, %v3233_v32  ;;  %v3619_v40 = vld [vmem:[%s6556_s3 + $0x568] sm:$0xf0] }
  0xad   :  { %v3622_v50 = vor.u32 %v4421_v38, %v3619_v40  ;;  %v3811_v6 = vld [vmem:[%s6556_s3 + $0x6e8] sm:$0xf0]  ;;  %v3145_v40 = vld [vmem:[%s6556_s3 + $0x190] sm:$0xf] }
  0xae   :  { %1818 = vmatpush.bf16.msra.mxu0 %v2978_v45  ;;  %1828 = vmatpush.bf16.msra.mxu1 %v3362_v46  ;;  %v4321_v45 = vld [vmem:[%s6556_s3 + $0x224] sm:$0xf0]  ;;  %v4277_v46 = vld [vmem:[%s6556_s3 + $0xcc] sm:$0xf]  ;;  %v3814_v15 = vor.u32 %v4469_v5, %v3811_v6 }
  0xaf   :  { %v3202_v55 = vor.u32 %v4321_v45, %v3201_v44  ;;  %v3046_v59 = vor.u32 %v4277_v46, %v3043_v47  ;;  %v4261_v10 = vld [vmem:[%s6556_s3 + $0x4c] sm:$0xf] }
  0xb0   :  { %1845 = vmatpush.bf16.msrb.mxu2 %v3522_v51  ;;  %1859 = vmatpush.bf16.msrb.mxu3 %v3778_v52  ;;  %v3878_v51 = vor.u32 %v4485_v41, %v3875_v42  ;;  %v4413_v52 = vld [vmem:[%s6556_s3 + $0x50c] sm:$0xf] }
  0xb1   :  { %v3590_v1 = vor.u32 %v4413_v52, %v3587_v56  ;;  %v2979_v11 = vld [vmem:[%s6556_s3 + $0x68] sm:$0xf0]  ;;  %v4506_v52 = vld [vmem:[%s6556_s3 + $0x7ec] sm:$0xf0] }
  0xb2   :  { %1819 = vmatpush.bf16.msra.mxu0 %v2946_v61  ;;  %1829 = vmatpush.bf16.msra.mxu1 %v3330_v62  ;;  %v4269_v61 = vld [vmem:[%s6556_s3 + $0x8c] sm:$0xf] }
  0xb3   :  { %v3011_v62 = vld [vmem:[%s6556_s3 + $0xa8] sm:$0xf0] }
  0xb4   :  { %1846 = vmatpush.bf16.msrb.mxu2 %v3490_v3  ;;  %1860 = vmatpush.bf16.msrb.mxu3 %v3746_v4  ;;  %v4405_v3 = vld [vmem:[%s6556_s3 + $0x4cc] sm:$0xf]  ;;  %v3014_v7 = vor.u32 %v4269_v61, %v3011_v62  ;;  %v3113_v62 = vld [vmem:[%s6556_s3 + $0x150] sm:$0xf] }
  0xb5   :  { %1778 = vmatmul.bf16.vlgmr.msrb.gmra.mxu1 %v5163_v19  ;;  %1820 = vmatmul.bf16.vlgmr.msra.gmra.mxu0 %v5075_v29  ;;  %v3555_v4 = vld [vmem:[%s6556_s3 + $0x4e8] sm:$0xf0] }
  0xb6   :  { %1868 = vmatpush.bf16.msrb.mxu0 %v3174_v63  ;;  %1830 = vmatpush.bf16.msra.mxu1 %v3298_v12  ;;  %v4365_v63 = vld [vmem:[%s6556_s3 + $0x38c] sm:$0xf]  ;;  %v3558_v14 = vor.u32 %v4405_v3, %v3555_v4  ;;  %v3913_v3 = vld [vmem:[%s6556_s3 + $0x790] sm:$0xf] }
  0xb7   :  { %v3398_v8 = vor.u32 %v4365_v63, %v3395_v0  ;;  %v4357_v12 = vld [vmem:[%s6556_s3 + $0x34c] sm:$0xf]  ;;  %v4298_v63 = vld [vmem:[%s6556_s3 + $0x16c] sm:$0xf0] }
  0xb8   :  { %1847 = vmatpush.bf16.msrb.mxu2 %v3458_v18  ;;  %1861 = vmatpush.bf16.msrb.mxu3 %v3714_v20  ;;  %v3363_v13 = vld [vmem:[%s6556_s3 + $0x368] sm:$0xf0]  ;;  %v2982_v20 = vor.u32 %v4261_v10, %v2979_v11  ;;  %v3657_v0 = vld [vmem:[%s6556_s3 + $0x590] sm:$0xf] }
  0xb9   :  { %v3523_v17 = vld [vmem:[%s6556_s3 + $0x4a8] sm:$0xf0]  ;;  %v3366_v21 = vor.u32 %v4357_v12, %v3363_v13  ;;  %v4498_v4 = vld [vmem:[%s6556_s3 + $0x7ac] sm:$0xf0] }
  0xba   :  { %1869 = vmatpush.bf16.msrb.mxu0 %v3142_v16  ;;  %1831 = vmatpush.bf16.msra.mxu1 %v3266_v26  ;;  %v4397_v16 = vld [vmem:[%s6556_s3 + $0x48c] sm:$0xf]  ;;  %v3914_v10 = vor.u32 %v4498_v4, %v3913_v3  ;;  %v3081_v11 = vld [vmem:[%s6556_s3 + $0x110] sm:$0xf]  ;;  %v3179_v4 = vld [vmem:[%s6556_s3 + $0x1f0] sm:$0xf0] }
  0xbb   :  { %1848 = vmatmul.bf16.vlgmr.msrb.gmra.mxu2 %v5106_v53  ;;  %1862 = vmatmul.bf16.vlgmr.msrb.gmra.mxu3 %v5108_v54  ;;  %v4461_v9 = vld [vmem:[%s6556_s3 + $0x68c] sm:$0xf]  ;;  %v3526_v26 = vor.u32 %v4397_v16, %v3523_v17  ;;  %v4290_v12 = vld [vmem:[%s6556_s3 + $0x12c] sm:$0xf0] }
  0xbc   :  { %1896 = vmatpush.bf16.msra.mxu2 %v3686_v23  ;;  %1910 = vmatpush.bf16.msra.mxu3 %v3942_v24  ;;  %v3779_v18 = vld [vmem:[%s6556_s3 + $0x6a8] sm:$0xf0]  ;;  %v3625_v13 = vld [vmem:[%s6556_s3 + $0x550] sm:$0xf] }
  0xbd   :  { %v4253_v22 = vld [vmem:[%s6556_s3 + $0xc] sm:$0xf]  ;;  %v3782_v27 = vor.u32 %v4461_v9, %v3779_v18  ;;  %v3881_v16 = vld [vmem:[%s6556_s3 + $0x750] sm:$0xf] }
  0xbe   :  { %1870 = vmatpush.bf16.msrb.mxu0 %v3110_v31  ;;  %1832 = vmatpush.bf16.msra.mxu1 %v3234_v39  ;;  %v2947_v23 = vld [vmem:[%s6556_s3 + $0x28] sm:$0xf0]  ;;  %v4490_v17 = vld [vmem:[%s6556_s3 + $0x76c] sm:$0xf0] }
  0xbf   :  { %v4349_v24 = vld [vmem:[%s6556_s3 + $0x30c] sm:$0xf]  ;;  %v2950_v35 = vor.u32 %v4253_v22, %v2947_v23  ;;  %v4378_v22 = vld [vmem:[%s6556_s3 + $0x3ec] sm:$0xf0] }
  0xc0   :  { %1897 = vmatpush.bf16.msra.mxu2 %v3654_v36  ;;  %1911 = vmatpush.bf16.msra.mxu3 %v3910_v37  ;;  %v3331_v25 = vld [vmem:[%s6556_s3 + $0x328] sm:$0xf0]  ;;  %v3178_v37 = vor.u32 %v4314_v30, %v3177_v28  ;;  %v3593_v28 = vld [vmem:[%s6556_s3 + $0x510] sm:$0xf] }
  0xc1   :  { %v4389_v31 = vld [vmem:[%s6556_s3 + $0x44c] sm:$0xf]  ;;  %v3334_v36 = vor.u32 %v4349_v24, %v3331_v25  ;;  %v3882_v24 = vor.u32 %v4490_v17, %v3881_v16  ;;  %v3049_v25 = vld [vmem:[%s6556_s3 + $0xd0] sm:$0xf]  ;;  %v4302_v16 = vld [vmem:[%s6556_s3 + $0x194] sm:$0xf] }
  0xc2   :  { %1871 = vmatpush.bf16.msrb.mxu0 %v3078_v43  ;;  %1833 = vmatpush.bf16.msra.mxu1 %v3202_v55  ;;  %v3491_v32 = vld [vmem:[%s6556_s3 + $0x468] sm:$0xf0]  ;;  %v4306_v43 = vld [vmem:[%s6556_s3 + $0x1ac] sm:$0xf0]  ;;  %v3147_v17 = vld [vmem:[%s6556_s3 + $0x1b0] sm:$0xf0] }
  0xc3   :  { %v4453_v33 = vld [vmem:[%s6556_s3 + $0x64c] sm:$0xf]  ;;  %v3494_v41 = vor.u32 %v4389_v31, %v3491_v32  ;;  %v3146_v55 = vor.u32 %v4306_v43, %v3145_v40  ;;  %v4418_v30 = vld [vmem:[%s6556_s3 + $0x52c] sm:$0xf0] }
  0xc4   :  { %1898 = vmatpush.bf16.msra.mxu2 %v3622_v50  ;;  %1912 = vmatpush.bf16.msra.mxu3 %v3878_v51  ;;  %v3747_v34 = vld [vmem:[%s6556_s3 + $0x668] sm:$0xf0]  ;;  %v4442_v50 = vld [vmem:[%s6556_s3 + $0x5ec] sm:$0xf0] }
  0xc5   :  { %1834 = vmatmul.bf16.vlgmr.msra.gmra.mxu1 %v5163_v19  ;;  %v4341_v38 = vld [vmem:[%s6556_s3 + $0x2cc] sm:$0xf]  ;;  %v3750_v42 = vor.u32 %v4453_v33, %v3747_v34  ;;  %v3945_v51 = vld [vmem:[%s6556_s3 + $0x7d0] sm:$0xf] }
  0xc6   :  { %1872 = vmatpush.bf16.msrb.mxu0 %v3046_v59  ;;  %1882 = vmatpush.bf16.msrb.mxu1 %v3430_v60  ;;  %v3299_v39 = vld [vmem:[%s6556_s3 + $0x2e8] sm:$0xf0]  ;;  %v3690_v60 = vor.u32 %v4442_v50, %v3689_v48  ;;  %v3946_v61 = vor.u32 %v4506_v52, %v3945_v51  ;;  %v3849_v32 = vld [vmem:[%s6556_s3 + $0x710] sm:$0xf] }
  0xc7   :  { %v4381_v44 = vld [vmem:[%s6556_s3 + $0x40c] sm:$0xf]  ;;  %v3302_v49 = vor.u32 %v4341_v38, %v3299_v39  ;;  %v4482_v33 = vld [vmem:[%s6556_s3 + $0x72c] sm:$0xf0] }
  0xc8   :  { %1899 = vmatpush.bf16.msra.mxu2 %v3590_v1  ;;  %1913 = vmatpush.bf16.msra.mxu3 %v3846_v2  ;;  %v3459_v45 = vld [vmem:[%s6556_s3 + $0x428] sm:$0xf0]  ;;  %v4434_v2 = vld [vmem:[%s6556_s3 + $0x5ac] sm:$0xf0]  ;;  %v3850_v40 = vor.u32 %v4482_v33, %v3849_v32 }
  0xc9   :  { %v4445_v46 = vld [vmem:[%s6556_s3 + $0x60c] sm:$0xf]  ;;  %v3462_v58 = vor.u32 %v4381_v44, %v3459_v45  ;;  %v3017_v38 = vld [vmem:[%s6556_s3 + $0x90] sm:$0xf] }
  0xca   :  { %1873 = vmatpush.bf16.msrb.mxu0 %v3014_v7  ;;  %1883 = vmatpush.bf16.msrb.mxu1 %v3398_v8  ;;  %v3715_v47 = vld [vmem:[%s6556_s3 + $0x628] sm:$0xf0]  ;;  %v3114_v7 = vor.u32 %v4298_v63, %v3113_v62  ;;  %v3658_v8 = vor.u32 %v4434_v2, %v3657_v0  ;;  %v4274_v39 = vld [vmem:[%s6556_s3 + $0xac] sm:$0xf0]  ;;  %v4310_v2 = vld [vmem:[%s6556_s3 + $0x1d4] sm:$0xf] }
  0xcb   :  { %v4333_v56 = vld [vmem:[%s6556_s3 + $0x28c] sm:$0xf]  ;;  %v3718_v59 = vor.u32 %v4445_v46, %v3715_v47  ;;  %v3817_v44 = vld [vmem:[%s6556_s3 + $0x6d0] sm:$0xf]  ;;  %v3018_v46 = vor.u32 %v4274_v39, %v3017_v38  ;;  %v4430_v39 = vld [vmem:[%s6556_s3 + $0x594] sm:$0xf] }
  0xcc   :  { %1900 = vmatpush.bf16.msra.mxu2 %v3558_v14  ;;  %1914 = vmatpush.bf16.msra.mxu3 %v3814_v15  ;;  %v3267_v57 = vld [vmem:[%s6556_s3 + $0x2a8] sm:$0xf0]  ;;  %v4426_v15 = vld [vmem:[%s6556_s3 + $0x56c] sm:$0xf0] }
  0xcd   :  { %v3270_v1 = vor.u32 %v4333_v56, %v3267_v57  ;;  %v4325_v5 = vld [vmem:[%s6556_s3 + $0x24c] sm:$0xf]  ;;  %v3626_v23 = vor.u32 %v4426_v15, %v3625_v13  ;;  %v4474_v45 = vld [vmem:[%s6556_s3 + $0x6ec] sm:$0xf0] }
  0xce   :  { %1874 = vmatpush.bf16.msrb.mxu0 %v2982_v20  ;;  %1884 = vmatpush.bf16.msrb.mxu1 %v3366_v21  ;;  %v3235_v6 = vld [vmem:[%s6556_s3 + $0x268] sm:$0xf0]  ;;  %v3082_v20 = vor.u32 %v4290_v12, %v3081_v11  ;;  %v3433_v21 = vld [vmem:[%s6556_s3 + $0x3d0] sm:$0xf]  ;;  %v3818_v52 = vor.u32 %v4474_v45, %v3817_v44 }
  0xcf   :  { %v3238_v14 = vor.u32 %v4325_v5, %v3235_v6  ;;  %v4317_v9 = vld [vmem:[%s6556_s3 + $0x20c] sm:$0xf]  ;;  %v3434_v31 = vor.u32 %v4378_v22, %v3433_v21  ;;  %v3369_v47 = vld [vmem:[%s6556_s3 + $0x350] sm:$0xf] }
  0xd0   :  { %1901 = vmatpush.bf16.msra.mxu2 %v3526_v26  ;;  %1915 = vmatpush.bf16.msra.mxu3 %v3782_v27  ;;  %v3203_v18 = vld [vmem:[%s6556_s3 + $0x228] sm:$0xf0]  ;;  %v4282_v26 = vld [vmem:[%s6556_s3 + $0xec] sm:$0xf0] }
  0xd1   :  { %v3206_v27 = vor.u32 %v4317_v9, %v3203_v18  ;;  %v3050_v34 = vor.u32 %v4282_v26, %v3049_v25  ;;  %v4362_v48 = vld [vmem:[%s6556_s3 + $0x36c] sm:$0xf0]  ;;  %v3691_v25 = vld [vmem:[%s6556_s3 + $0x5f0] sm:$0xf0] }
  0xd2   :  { %1875 = vmatpush.bf16.msrb.mxu0 %v2950_v35  ;;  %1885 = vmatpush.bf16.msrb.mxu1 %v3334_v36  ;;  %v3401_v35 = vld [vmem:[%s6556_s3 + $0x390] sm:$0xf]  ;;  %v3370_v57 = vor.u32 %v4362_v48, %v3369_v47  ;;  %v4502_v26 = vld [vmem:[%s6556_s3 + $0x7d4] sm:$0xf] }
  0xd3   :  { %v4370_v36 = vld [vmem:[%s6556_s3 + $0x3ac] sm:$0xf0]  ;;  %v4286_v47 = vld [vmem:[%s6556_s3 + $0x114] sm:$0xf] }
  0xd4   :  { %1902 = vmatpush.bf16.msra.mxu2 %v3494_v41  ;;  %1916 = vmatpush.bf16.msra.mxu3 %v3750_v42  ;;  %v3561_v41 = vld [vmem:[%s6556_s3 + $0x4d0] sm:$0xf]  ;;  %v3402_v43 = vor.u32 %v4370_v36, %v3401_v35  ;;  %v4294_v35 = vld [vmem:[%s6556_s3 + $0x154] sm:$0xf] }
  0xd5   :  { %1876 = vmatmul.bf16.vlgmr.msrb.gmra.mxu0 %v5075_v29  ;;  %v4410_v42 = vld [vmem:[%s6556_s3 + $0x4ec] sm:$0xf0]  ;;  %v3115_v36 = vld [vmem:[%s6556_s3 + $0x170] sm:$0xf0] }
  0xd6   :  { %1924 = vmatpush.bf16.msra.mxu0 %v3178_v37  ;;  %1886 = vmatpush.bf16.msrb.mxu1 %v3302_v49  ;;  %v3594_v37 = vor.u32 %v4418_v30, %v3593_v28  ;;  %v3562_v49 = vor.u32 %v4410_v42, %v3561_v41  ;;  %v2985_v50 = vld [vmem:[%s6556_s3 + $0x50] sm:$0xf]  ;;  %v4494_v41 = vld [vmem:[%s6556_s3 + $0x794] sm:$0xf]  ;;  %v3118_v45 = vor.u32 %v4294_v35, %v3115_v36 }
  0xd7   :  { %v4266_v51 = vld [vmem:[%s6556_s3 + $0x6c] sm:$0xf0]  ;;  %v3915_v42 = vld [vmem:[%s6556_s3 + $0x7b0] sm:$0xf0] }
  0xd8   :  { %1903 = vmatpush.bf16.msra.mxu2 %v3462_v58  ;;  %1917 = vmatpush.bf16.msra.mxu3 %v3718_v59  ;;  %v4402_v56 = vld [vmem:[%s6556_s3 + $0x4ac] sm:$0xf0]  ;;  %v3083_v48 = vld [vmem:[%s6556_s3 + $0x130] sm:$0xf0] }
  0xd9   :  { %v3785_v58 = vld [vmem:[%s6556_s3 + $0x690] sm:$0xf]  ;;  %v4350_v35 = vld [vmem:[%s6556_s3 + $0x314] sm:$0xf] }
  0xda   :  { %1925 = vmatpush.bf16.msra.mxu0 %v3146_v55  ;;  %1887 = vmatpush.bf16.msrb.mxu1 %v3270_v1  ;;  %v3529_v55 = vld [vmem:[%s6556_s3 + $0x490] sm:$0xf]  ;;  %v3339_v36 = vld [vmem:[%s6556_s3 + $0x330] sm:$0xf0] }
  0xdb   :  { %1904 = vmatmul.bf16.vlgmr.msra.gmra.mxu2 %v5106_v53  ;;  %1918 = vmatmul.bf16.vlgmr.msra.gmra.mxu3 %v5108_v54  ;;  %v4466_v59 = vld [vmem:[%s6556_s3 + $0x6ac] sm:$0xf0]  ;;  %v3530_v63 = vor.u32 %v4402_v56, %v3529_v55  ;;  %v4486_v55 = vld [vmem:[%s6556_s3 + $0x754] sm:$0xf] }
  0xdc   :  { %1952 = vmatpush.bf16.msrb.mxu2 %v3690_v60  ;;  %1966 = vmatpush.bf16.msrb.mxu3 %v3946_v61  ;;  %v2986_v60 = vor.u32 %v4266_v51, %v2985_v50  ;;  %v3337_v61 = vld [vmem:[%s6556_s3 + $0x310] sm:$0xf]  ;;  %v3786_v3 = vor.u32 %v4466_v59, %v3785_v58  ;;  %v4422_v51 = vld [vmem:[%s6556_s3 + $0x554] sm:$0xf]  ;;  %v3086_v59 = vor.u32 %v4286_v47, %v3083_v48 }
  0xdd   :  { %v4354_v62 = vld [vmem:[%s6556_s3 + $0x32c] sm:$0xf0]  ;;  %v3883_v56 = vld [vmem:[%s6556_s3 + $0x770] sm:$0xf0] }
  0xde   :  { %1926 = vmatpush.bf16.msra.mxu0 %v3114_v7  ;;  %1888 = vmatpush.bf16.msrb.mxu1 %v3238_v14  ;;  %v2953_v0 = vld [vmem:[%s6556_s3 + $0x10] sm:$0xf]  ;;  %v3338_v7 = vor.u32 %v4354_v62, %v3337_v61  ;;  %v3182_v14 = vor.u32 %v4310_v2, %v3179_v4  ;;  %v3435_v61 = vld [vmem:[%s6556_s3 + $0x3f0] sm:$0xf0] }
  0xdf   :  { %v4258_v1 = vld [vmem:[%s6556_s3 + $0x2c] sm:$0xf0]  ;;  %v3595_v4 = vld [vmem:[%s6556_s3 + $0x530] sm:$0xf0] }
  0xe0   :  { %1953 = vmatpush.bf16.msrb.mxu2 %v3658_v8  ;;  %1967 = vmatpush.bf16.msrb.mxu3 %v3914_v10  ;;  %v3497_v5 = vld [vmem:[%s6556_s3 + $0x450] sm:$0xf]  ;;  %v2954_v11 = vor.u32 %v4258_v1, %v2953_v0  ;;  %v3051_v0 = vld [vmem:[%s6556_s3 + $0xf0] sm:$0xf0]  ;;  %v3886_v1 = vor.u32 %v4486_v55, %v3883_v56  ;;  %v3153_v55 = vld [vmem:[%s6556_s3 + $0x198] sm:$0xf] }
  0xe1   :  { %v4394_v6 = vld [vmem:[%s6556_s3 + $0x46c] sm:$0xf0]  ;;  %v3755_v47 = vld [vmem:[%s6556_s3 + $0x670] sm:$0xf0]  ;;  %v4307_v56 = vld [vmem:[%s6556_s3 + $0x1b4] sm:$0xf0] }
  0xe2   :  { %1927 = vmatpush.bf16.msra.mxu0 %v3082_v20  ;;  %1889 = vmatpush.bf16.msrb.mxu1 %v3206_v27  ;;  %v3753_v8 = vld [vmem:[%s6556_s3 + $0x650] sm:$0xf]  ;;  %v3498_v15 = vor.u32 %v4394_v6, %v3497_v5  ;;  %v3947_v27 = vld [vmem:[%s6556_s3 + $0x7f0] sm:$0xf0] }
  0xe3   :  { %v4458_v10 = vld [vmem:[%s6556_s3 + $0x66c] sm:$0xf0]  ;;  %v4478_v6 = vld [vmem:[%s6556_s3 + $0x714] sm:$0xf] }
  0xe4   :  { %1954 = vmatpush.bf16.msrb.mxu2 %v3626_v23  ;;  %1968 = vmatpush.bf16.msrb.mxu3 %v3882_v24  ;;  %v3305_v12 = vld [vmem:[%s6556_s3 + $0x2d0] sm:$0xf]  ;;  %v3754_v18 = vor.u32 %v4458_v10, %v3753_v8  ;;  %v4438_v24 = vld [vmem:[%s6556_s3 + $0x5d4] sm:$0xf] }
  0xe5   :  { %1890 = vmatmul.bf16.vlgmr.msrb.gmra.mxu1 %v5163_v19  ;;  %v4346_v13 = vld [vmem:[%s6556_s3 + $0x2ec] sm:$0xf0]  ;;  %v4366_v10 = vld [vmem:[%s6556_s3 + $0x394] sm:$0xf] }
  0xe6   :  { %1938 = vmatpush.bf16.msra.mxu1 %v3434_v31  ;;  %1928 = vmatpush.bf16.msra.mxu0 %v3050_v34  ;;  %v3465_v9 = vld [vmem:[%s6556_s3 + $0x410] sm:$0xf]  ;;  %v3306_v23 = vor.u32 %v4346_v13, %v3305_v12  ;;  %v3150_v31 = vor.u32 %v4302_v16, %v3147_v17  ;;  %v3694_v34 = vor.u32 %v4438_v24, %v3691_v25  ;;  %v4270_v13 = vld [vmem:[%s6556_s3 + $0x94] sm:$0xf] }
  0xe7   :  { %v4386_v20 = vld [vmem:[%s6556_s3 + $0x42c] sm:$0xf0]  ;;  %v4406_v16 = vld [vmem:[%s6556_s3 + $0x4d4] sm:$0xf] }
  0xe8   :  { %1955 = vmatpush.bf16.msrb.mxu2 %v3594_v37  ;;  %1969 = vmatpush.bf16.msrb.mxu3 %v3850_v40  ;;  %v3721_v21 = vld [vmem:[%s6556_s3 + $0x610] sm:$0xf]  ;;  %v3466_v32 = vor.u32 %v4386_v20, %v3465_v9  ;;  %v3950_v37 = vor.u32 %v4502_v26, %v3947_v27  ;;  %v3659_v40 = vld [vmem:[%s6556_s3 + $0x5b0] sm:$0xf0] }
  0xe9   :  { %v4450_v22 = vld [vmem:[%s6556_s3 + $0x62c] sm:$0xf0]  ;;  %v3563_v17 = vld [vmem:[%s6556_s3 + $0x4f0] sm:$0xf0] }
  0xea   :  { %1939 = vmatpush.bf16.msra.mxu1 %v3402_v43  ;;  %1929 = vmatpush.bf16.msra.mxu0 %v3018_v46  ;;  %v3273_v28 = vld [vmem:[%s6556_s3 + $0x290] sm:$0xf]  ;;  %v3722_v33 = vor.u32 %v4450_v22, %v3721_v21  ;;  %v3662_v46 = vor.u32 %v4430_v39, %v3659_v40  ;;  %v3819_v20 = vld [vmem:[%s6556_s3 + $0x6f0] sm:$0xf0]  ;;  %v3566_v24 = vor.u32 %v4406_v16, %v3563_v17  ;;  %v3185_v40 = vld [vmem:[%s6556_s3 + $0x1d8] sm:$0xf] }
  0xeb   :  { %v4338_v30 = vld [vmem:[%s6556_s3 + $0x2ac] sm:$0xf0]  ;;  %v4358_v22 = vld [vmem:[%s6556_s3 + $0x354] sm:$0xf]  ;;  %v3921_v16 = vld [vmem:[%s6556_s3 + $0x798] sm:$0xf] }
  0xec   :  { %1956 = vmatpush.bf16.msrb.mxu2 %v3562_v49  ;;  %1970 = vmatpush.bf16.msrb.mxu3 %v3818_v52  ;;  %v3274_v38 = vor.u32 %v4338_v30, %v3273_v28  ;;  %v3241_v43 = vld [vmem:[%s6556_s3 + $0x250] sm:$0xf]  ;;  %v3918_v49 = vor.u32 %v4494_v41, %v3915_v42  ;;  %v3627_v52 = vld [vmem:[%s6556_s3 + $0x570] sm:$0xf0]  ;;  %v4315_v42 = vld [vmem:[%s6556_s3 + $0x1f4] sm:$0xf0] }
  0xed   :  { %v4330_v44 = vld [vmem:[%s6556_s3 + $0x26c] sm:$0xf0]  ;;  %v3630_v62 = vor.u32 %v4422_v51, %v3627_v52  ;;  %v4262_v25 = vld [vmem:[%s6556_s3 + $0x54] sm:$0xf]  ;;  %v3186_v51 = vor.u32 %v4315_v42, %v3185_v40  ;;  %v4499_v17 = vld [vmem:[%s6556_s3 + $0x7b4] sm:$0xf0] }
  0xee   :  { %1940 = vmatpush.bf16.msra.mxu1 %v3370_v57  ;;  %1930 = vmatpush.bf16.msra.mxu0 %v2986_v60  ;;  %v3242_v50 = vor.u32 %v4330_v44, %v3241_v43  ;;  %v3209_v57 = vld [vmem:[%s6556_s3 + $0x210] sm:$0xf]  ;;  %v4374_v60 = vld [vmem:[%s6556_s3 + $0x3d4] sm:$0xf]  ;;  %v4419_v42 = vld [vmem:[%s6556_s3 + $0x534] sm:$0xf0] }
  0xef   :  { %v4322_v58 = vld [vmem:[%s6556_s3 + $0x22c] sm:$0xf0]  ;;  %v3438_v5 = vor.u32 %v4374_v60, %v3435_v61  ;;  %v2987_v26 = vld [vmem:[%s6556_s3 + $0x70] sm:$0xf0] }
  0xf0   :  { %1957 = vmatpush.bf16.msrb.mxu2 %v3530_v63  ;;  %1971 = vmatpush.bf16.msrb.mxu3 %v3786_v3  ;;  %v4278_v63 = vld [vmem:[%s6556_s3 + $0xd4] sm:$0xf]  ;;  %v3210_v2 = vor.u32 %v4322_v58, %v3209_v57 }
  0xf1   :  { %v4414_v3 = vld [vmem:[%s6556_s3 + $0x514] sm:$0xf]  ;;  %v3054_v8 = vor.u32 %v4278_v63, %v3051_v0  ;;  %v3697_v63 = vld [vmem:[%s6556_s3 + $0x5d8] sm:$0xf] }
  0xf2   :  { %1941 = vmatpush.bf16.msra.mxu1 %v3338_v7  ;;  %1931 = vmatpush.bf16.msra.mxu0 %v2954_v11  ;;  %v3851_v7 = vld [vmem:[%s6556_s3 + $0x730] sm:$0xf0]  ;;  %v3598_v12 = vor.u32 %v4414_v3, %v3595_v4  ;;  %v4443_v0 = vld [vmem:[%s6556_s3 + $0x5f4] sm:$0xf0] }
  0xf3   :  { %v3403_v11 = vld [vmem:[%s6556_s3 + $0x3b0] sm:$0xf0] }
  0xf4   :  { %1958 = vmatpush.bf16.msrb.mxu2 %v3498_v15  ;;  %1972 = vmatpush.bf16.msrb.mxu3 %v3754_v18  ;;  %v3854_v15 = vor.u32 %v4478_v6, %v3851_v7  ;;  %v3406_v9 = vor.u32 %v4366_v10, %v3403_v11  ;;  %v4470_v18 = vld [vmem:[%s6556_s3 + $0x6d4] sm:$0xf]  ;;  %v3121_v10 = vld [vmem:[%s6556_s3 + $0x158] sm:$0xf] }
  0xf5   :  { %1932 = vmatmul.bf16.vlgmr.msra.gmra.mxu0 %v5075_v29  ;;  %v3822_v27 = vor.u32 %v4470_v18, %v3819_v20  ;;  %v4398_v28 = vld [vmem:[%s6556_s3 + $0x494] sm:$0xf]  ;;  %v4299_v11 = vld [vmem:[%s6556_s3 + $0x174] sm:$0xf0] }
  0xf6   :  { %1980 = vmatpush.bf16.msrb.mxu0 %v3182_v14  ;;  %1942 = vmatpush.bf16.msra.mxu1 %v3306_v23  ;;  %v3019_v14 = vld [vmem:[%s6556_s3 + $0xb0] sm:$0xf0]  ;;  %v3122_v20 = vor.u32 %v4299_v11, %v3121_v10  ;;  %v3345_v11 = vld [vmem:[%s6556_s3 + $0x318] sm:$0xf] }
  0xf7   :  { %v3022_v21 = vor.u32 %v4270_v13, %v3019_v14  ;;  %v3371_v23 = vld [vmem:[%s6556_s3 + $0x370] sm:$0xf0]  ;;  %v3665_v14 = vld [vmem:[%s6556_s3 + $0x598] sm:$0xf] }
  0xf8   :  { %1959 = vmatpush.bf16.msrb.mxu2 %v3466_v32  ;;  %1973 = vmatpush.bf16.msrb.mxu3 %v3722_v33  ;;  %v3531_v30 = vld [vmem:[%s6556_s3 + $0x4b0] sm:$0xf0] }
  0xf9   :  { %v4462_v32 = vld [vmem:[%s6556_s3 + $0x694] sm:$0xf] }
  0xfa   :  { %1981 = vmatpush.bf16.msrb.mxu0 %v3150_v31  ;;  %1943 = vmatpush.bf16.msra.mxu1 %v3274_v38  ;;  %v3374_v31 = vor.u32 %v4358_v22, %v3371_v23  ;;  %v3787_v33 = vld [vmem:[%s6556_s3 + $0x6b0] sm:$0xf0]  ;;  %v3089_v22 = vld [vmem:[%s6556_s3 + $0x118] sm:$0xf] }
  0xfb   :  { %1960 = vmatmul.bf16.vlgmr.msrb.gmra.mxu2 %v5106_v53  ;;  %1974 = vmatmul.bf16.vlgmr.msrb.gmra.mxu3 %v5108_v54  ;;  %v4254_v38 = vld [vmem:[%s6556_s3 + $0x14] sm:$0xf]  ;;  %v3790_v41 = vor.u32 %v4462_v32, %v3787_v33  ;;  %v4291_v23 = vld [vmem:[%s6556_s3 + $0x134] sm:$0xf0] }
  0xfc   :  { %2008 = vmatpush.bf16.msra.mxu2 %v3694_v34  ;;  %2022 = vmatpush.bf16.msra.mxu3 %v3950_v37  ;;  %v2990_v34 = vor.u32 %v4262_v25, %v2987_v26  ;;  %v3534_v37 = vor.u32 %v4398_v28, %v3531_v30  ;;  %v2955_v39 = vld [vmem:[%s6556_s3 + $0x30] sm:$0xf0]  ;;  %v3633_v26 = vld [vmem:[%s6556_s3 + $0x558] sm:$0xf]  ;;  %v3090_v33 = vor.u32 %v4291_v23, %v3089_v22 }
  0xfd   :  { %v4390_v43 = vld [vmem:[%s6556_s3 + $0x454] sm:$0xf]  ;;  %v2958_v48 = vor.u32 %v4254_v38, %v2955_v39  ;;  %v3889_v28 = vld [vmem:[%s6556_s3 + $0x758] sm:$0xf] }
  0xfe   :  { %1982 = vmatpush.bf16.msrb.mxu0 %v3118_v45  ;;  %1944 = vmatpush.bf16.msra.mxu1 %v3242_v50  ;;  %v3499_v44 = vld [vmem:[%s6556_s3 + $0x470] sm:$0xf0]  ;;  %v3342_v45 = vor.u32 %v4350_v35, %v3339_v36  ;;  %v4491_v30 = vld [vmem:[%s6556_s3 + $0x774] sm:$0xf0] }
  0xff   :  { %v3307_v50 = vld [vmem:[%s6556_s3 + $0x2f0] sm:$0xf0]  ;;  %v3502_v52 = vor.u32 %v4390_v43, %v3499_v44  ;;  %v4379_v35 = vld [vmem:[%s6556_s3 + $0x3f4] sm:$0xf0]  ;;  %v3890_v39 = vor.u32 %v4491_v30, %v3889_v28 }
 0x100   :  { %2009 = vmatpush.bf16.msra.mxu2 %v3662_v46  ;;  %2023 = vmatpush.bf16.msra.mxu3 %v3918_v49  ;;  %v4454_v46 = vld [vmem:[%s6556_s3 + $0x654] sm:$0xf]  ;;  %v4283_v38 = vld [vmem:[%s6556_s3 + $0xf4] sm:$0xf0] }
 0x101   :  { %v4342_v49 = vld [vmem:[%s6556_s3 + $0x2d4] sm:$0xf]  ;;  %v3758_v58 = vor.u32 %v4454_v46, %v3755_v47  ;;  %v3857_v44 = vld [vmem:[%s6556_s3 + $0x718] sm:$0xf] }
 0x102   :  { %1983 = vmatpush.bf16.msrb.mxu0 %v3086_v59  ;;  %1945 = vmatpush.bf16.msra.mxu1 %v3210_v2  ;;  %v4382_v57 = vld [vmem:[%s6556_s3 + $0x414] sm:$0xf]  ;;  %v4507_v2 = vld [vmem:[%s6556_s3 + $0x7f4] sm:$0xf0] }
 0x103   :  { %v3467_v59 = vld [vmem:[%s6556_s3 + $0x430] sm:$0xf0]  ;;  %v3409_v47 = vld [vmem:[%s6556_s3 + $0x398] sm:$0xf] }
 0x104   :  { %2010 = vmatpush.bf16.msra.mxu2 %v3630_v62  ;;  %2024 = vmatpush.bf16.msra.mxu3 %v3886_v1  ;;  %v4446_v60 = vld [vmem:[%s6556_s3 + $0x614] sm:$0xf]  ;;  %v3310_v62 = vor.u32 %v4342_v49, %v3307_v50  ;;  %v3953_v1 = vld [vmem:[%s6556_s3 + $0x7d8] sm:$0xf]  ;;  %v3470_v6 = vor.u32 %v4382_v57, %v3467_v59 }
 0x105   :  { %1946 = vmatmul.bf16.vlgmr.msra.gmra.mxu1 %v5163_v19  ;;  %v3723_v61 = vld [vmem:[%s6556_s3 + $0x630] sm:$0xf0]  ;;  %v3025_v50 = vld [vmem:[%s6556_s3 + $0x98] sm:$0xf] }
 0x106   :  { %1994 = vmatpush.bf16.msrb.mxu1 %v3438_v5  ;;  %1984 = vmatpush.bf16.msrb.mxu0 %v3054_v8  ;;  %v4334_v3 = vld [vmem:[%s6556_s3 + $0x294] sm:$0xf]  ;;  %v3154_v5 = vor.u32 %v4307_v56, %v3153_v55  ;;  %v3726_v7 = vor.u32 %v4446_v60, %v3723_v61  ;;  %v3698_v8 = vor.u32 %v4443_v0, %v3697_v63  ;;  %v3569_v55 = vld [vmem:[%s6556_s3 + $0x4d8] sm:$0xf] }
 0x107   :  { %v3275_v4 = vld [vmem:[%s6556_s3 + $0x2b0] sm:$0xf0]  ;;  %v4411_v56 = vld [vmem:[%s6556_s3 + $0x4f4] sm:$0xf0] }
 0x108   :  { %2011 = vmatpush.bf16.msra.mxu2 %v3598_v12  ;;  %2025 = vmatpush.bf16.msra.mxu3 %v3854_v15  ;;  %v3954_v12 = vor.u32 %v4507_v2, %v3953_v1  ;;  %v3278_v13 = vor.u32 %v4334_v3, %v3275_v4  ;;  %v4435_v15 = vld [vmem:[%s6556_s3 + $0x5b4] sm:$0xf0]  ;;  %v3243_v18 = vld [vmem:[%s6556_s3 + $0x270] sm:$0xf0]  ;;  %v3570_v63 = vor.u32 %v4411_v56, %v3569_v55  ;;  %v3123_v55 = vld [vmem:[%s6556_s3 + $0x178] sm:$0xf0] }
 0x109   :  { %v3211_v32 = vld [vmem:[%s6556_s3 + $0x230] sm:$0xf0]  ;;  %v4475_v59 = vld [vmem:[%s6556_s3 + $0x6f4] sm:$0xf0] }
 0x10a   :  { %1995 = vmatpush.bf16.msrb.mxu1 %v3406_v9  ;;  %1985 = vmatpush.bf16.msrb.mxu0 %v3022_v21  ;;  %v4326_v9 = vld [vmem:[%s6556_s3 + $0x254] sm:$0xf]  ;;  %v3666_v21 = vor.u32 %v4435_v15, %v3665_v14  ;;  %v3377_v61 = vld [vmem:[%s6556_s3 + $0x358] sm:$0xf] }
 0x10b   :  { %v3246_v25 = vor.u32 %v4326_v9, %v3243_v18  ;;  %v2993_v0 = vld [vmem:[%s6556_s3 + $0x58] sm:$0xf]  ;;  %v3187_v9 = vld [vmem:[%s6556_s3 + $0x1f8] sm:$0xf0] }
 0x10c   :  { %2012 = vmatpush.bf16.msra.mxu2 %v3566_v24  ;;  %2026 = vmatpush.bf16.msra.mxu3 %v3822_v27  ;;  %v3922_v24 = vor.u32 %v4499_v17, %v3921_v16  ;;  %v4427_v27 = vld [vmem:[%s6556_s3 + $0x574] sm:$0xf0]  ;;  %v4311_v16 = vld [vmem:[%s6556_s3 + $0x1dc] sm:$0xf] }
 0x10d   :  { %v3634_v36 = vor.u32 %v4427_v27, %v3633_v26  ;;  %v4267_v1 = vld [vmem:[%s6556_s3 + $0x74] sm:$0xf0]  ;;  %v3190_v28 = vor.u32 %v4311_v16, %v3187_v9  ;;  %v3443_v9 = vld [vmem:[%s6556_s3 + $0x3f8] sm:$0xf0] }
 0x10e   :  { %1996 = vmatpush.bf16.msrb.mxu1 %v3374_v31  ;;  %1986 = vmatpush.bf16.msrb.mxu0 %v2990_v34  ;;  %v4318_v31 = vld [vmem:[%s6556_s3 + $0x214] sm:$0xf]  ;;  %v3441_v34 = vld [vmem:[%s6556_s3 + $0x3d8] sm:$0xf]  ;;  %v2994_v10 = vor.u32 %v4267_v1, %v2993_v0 }
 0x10f   :  { %v3214_v40 = vor.u32 %v4318_v31, %v3211_v32  ;;  %v3442_v43 = vor.u32 %v4379_v35, %v3441_v34  ;;  %v3537_v3 = vld [vmem:[%s6556_s3 + $0x498] sm:$0xf]  ;;  %v4303_v31 = vld [vmem:[%s6556_s3 + $0x19c] sm:$0xf] }
 0x110   :  { %2013 = vmatpush.bf16.msra.mxu2 %v3534_v37  ;;  %2027 = vmatpush.bf16.msra.mxu3 %v3790_v41  ;;  %v3057_v37 = vld [vmem:[%s6556_s3 + $0xd8] sm:$0xf]  ;;  %v3155_v32 = vld [vmem:[%s6556_s3 + $0x1b8] sm:$0xf0] }
 0x111   :  { %v3601_v41 = vld [vmem:[%s6556_s3 + $0x518] sm:$0xf]  ;;  %v3058_v46 = vor.u32 %v4283_v38, %v3057_v37 }
 0x112   :  { %1997 = vmatpush.bf16.msrb.mxu1 %v3342_v45  ;;  %1987 = vmatpush.bf16.msrb.mxu0 %v2958_v48  ;;  %v4483_v45 = vld [vmem:[%s6556_s3 + $0x734] sm:$0xf0]  ;;  %v3602_v49 = vor.u32 %v4419_v42, %v3601_v41  ;;  %v3699_v41 = vld [vmem:[%s6556_s3 + $0x5f8] sm:$0xf0] }
 0x113   :  { %v4371_v48 = vld [vmem:[%s6556_s3 + $0x3b4] sm:$0xf0]  ;;  %v4503_v42 = vld [vmem:[%s6556_s3 + $0x7dc] sm:$0xf] }
 0x114   :  { %2014 = vmatpush.bf16.msra.mxu2 %v3502_v52  ;;  %2028 = vmatpush.bf16.msra.mxu3 %v3758_v58  ;;  %v3858_v52 = vor.u32 %v4483_v45, %v3857_v44  ;;  %v3410_v57 = vor.u32 %v4371_v48, %v3409_v47  ;;  %v3825_v58 = vld [vmem:[%s6556_s3 + $0x6d8] sm:$0xf]  ;;  %v3955_v44 = vld [vmem:[%s6556_s3 + $0x7f8] sm:$0xf0]  ;;  %v3158_v47 = vor.u32 %v4303_v31, %v3155_v32 }
 0x115   :  { %1988 = vmatmul.bf16.vlgmr.msrb.gmra.mxu0 %v5075_v29  ;;  %v3826_v2 = vor.u32 %v4475_v59, %v3825_v58  ;;  %v4403_v4 = vld [vmem:[%s6556_s3 + $0x4b4] sm:$0xf0]  ;;  %v3958_v56 = vor.u32 %v4503_v42, %v3955_v44  ;;  %v4431_v58 = vld [vmem:[%s6556_s3 + $0x59c] sm:$0xf] }
 0x116   :  { %2036 = vmatpush.bf16.msra.mxu0 %v3186_v51  ;;  %1998 = vmatpush.bf16.msrb.mxu1 %v3310_v62  ;;  %v4275_v51 = vld [vmem:[%s6556_s3 + $0xb4] sm:$0xf0]  ;;  %v3667_v59 = vld [vmem:[%s6556_s3 + $0x5b8] sm:$0xf0] }
 0x117   :  { %v3026_v60 = vor.u32 %v4275_v51, %v3025_v50  ;;  %v4363_v62 = vld [vmem:[%s6556_s3 + $0x374] sm:$0xf0]  ;;  %v4479_v31 = vld [vmem:[%s6556_s3 + $0x71c] sm:$0xf] }
 0x118   :  { %2015 = vmatpush.bf16.msra.mxu2 %v3470_v6  ;;  %2029 = vmatpush.bf16.msra.mxu3 %v3726_v7  ;;  %v3793_v6 = vld [vmem:[%s6556_s3 + $0x698] sm:$0xf]  ;;  %v3859_v32 = vld [vmem:[%s6556_s3 + $0x738] sm:$0xf0] }
 0x119   :  { %v4467_v7 = vld [vmem:[%s6556_s3 + $0x6b4] sm:$0xf0]  ;;  %v4407_v42 = vld [vmem:[%s6556_s3 + $0x4dc] sm:$0xf] }
 0x11a   :  { %2037 = vmatpush.bf16.msra.mxu0 %v3154_v5  ;;  %1999 = vmatpush.bf16.msrb.mxu1 %v3278_v13  ;;  %v3378_v5 = vor.u32 %v4363_v62, %v3377_v61  ;;  %v3538_v13 = vor.u32 %v4403_v4, %v3537_v3  ;;  %v2961_v14 = vld [vmem:[%s6556_s3 + $0x18] sm:$0xf]  ;;  %v3794_v17 = vor.u32 %v4467_v7, %v3793_v6  ;;  %v3923_v61 = vld [vmem:[%s6556_s3 + $0x7b8] sm:$0xf0] }
 0x11b   :  { %2016 = vmatmul.bf16.vlgmr.msra.gmra.mxu2 %v5106_v53  ;;  %2030 = vmatmul.bf16.vlgmr.msra.gmra.mxu3 %v5108_v54  ;;  %v4259_v15 = vld [vmem:[%s6556_s3 + $0x34] sm:$0xf0]  ;;  %v4287_v3 = vld [vmem:[%s6556_s3 + $0x11c] sm:$0xf] }
 0x11c   :  { %2064 = vmatpush.bf16.msrb.mxu2 %v3698_v8  ;;  %2078 = vmatpush.bf16.msrb.mxu3 %v3954_v12  ;;  %v6002_v8 = vpop.f32.mrf.mxu0  ;;  %v4355_v12 = vld [vmem:[%s6556_s3 + $0x334] sm:$0xf0]  ;;  %v3091_v4 = vld [vmem:[%s6556_s3 + $0x138] sm:$0xf0] }
 0x11d   :  { %v3505_v18 = vld [vmem:[%s6556_s3 + $0x458] sm:$0xf]  ;;  %v3346_v22 = vor.u32 %v4355_v12, %v3345_v11  ;;  %v4423_v7 = vld [vmem:[%s6556_s3 + $0x55c] sm:$0xf]  ;;  %v3094_v16 = vor.u32 %v4287_v3, %v3091_v4 }
 0x11e   :  { %2038 = vmatpush.bf16.msra.mxu0 %v3122_v20  ;;  %2000 = vmatpush.bf16.msrb.mxu1 %v3246_v25  ;;  %v4395_v20 = vld [vmem:[%s6556_s3 + $0x474] sm:$0xf0]  ;;  %v2962_v25 = vor.u32 %v4259_v15, %v2961_v14  ;;  %v6051_v34 = vpop.f32.mrf.mxu2  ;;  %v4487_v11 = vld [vmem:[%s6556_s3 + $0x75c] sm:$0xf] }
 0x11f   :  { %v3761_v23 = vld [vmem:[%s6556_s3 + $0x658] sm:$0xf]  ;;  %v3506_v30 = vor.u32 %v4395_v20, %v3505_v18  ;;  %v3571_v44 = vld [vmem:[%s6556_s3 + $0x4f8] sm:$0xf0] }
 0x120   :  { %2065 = vmatpush.bf16.msrb.mxu2 %v3666_v21  ;;  %2079 = vmatpush.bf16.msrb.mxu3 %v3922_v24  ;;  %v4459_v24 = vld [vmem:[%s6556_s3 + $0x674] sm:$0xf0]  ;;  %v4351_v3 = vld [vmem:[%s6556_s3 + $0x31c] sm:$0xf] }
 0x121   :  { %v3313_v26 = vld [vmem:[%s6556_s3 + $0x2d8] sm:$0xf]  ;;  %v3762_v35 = vor.u32 %v4459_v24, %v3761_v23  ;;  %v3059_v23 = vld [vmem:[%s6556_s3 + $0xf8] sm:$0xf0] }
 0x122   :  { %2039 = vmatpush.bf16.msra.mxu0 %v3090_v33  ;;  %2001 = vmatpush.bf16.msrb.mxu1 %v3214_v40  ;;  %v6028_v21 = vpop.f32.mrf.mxu1  ;;  %v4347_v27 = vld [vmem:[%s6556_s3 + $0x2f4] sm:$0xf0]  ;;  %v4439_v40 = vld [vmem:[%s6556_s3 + $0x5dc] sm:$0xf] }
 0x123   :  { %v3473_v33 = vld [vmem:[%s6556_s3 + $0x418] sm:$0xf]  ;;  %v3702_v51 = vor.u32 %v4439_v40, %v3699_v41  ;;  %v3862_v41 = vor.u32 %v4479_v31, %v3859_v32  ;;  %v3347_v4 = vld [vmem:[%s6556_s3 + $0x338] sm:$0xf0] }
 0x124   :  { %2066 = vmatpush.bf16.msrb.mxu2 %v3634_v36  ;;  %2080 = vmatpush.bf16.msrb.mxu3 %v3890_v39  ;;  %v4387_v36 = vld [vmem:[%s6556_s3 + $0x434] sm:$0xf0]  ;;  %v3314_v39 = vor.u32 %v4347_v27, %v3313_v26  ;;  %v4415_v26 = vld [vmem:[%s6556_s3 + $0x51c] sm:$0xf] }
 0x125   :  { %2002 = vmatmul.bf16.vlgmr.msrb.gmra.mxu1 %v5163_v19  ;;  %v3729_v37 = vld [vmem:[%s6556_s3 + $0x618] sm:$0xf]  ;;  %v3474_v48 = vor.u32 %v4387_v36, %v3473_v33  ;;  %v3603_v27 = vld [vmem:[%s6556_s3 + $0x538] sm:$0xf0] }
 0x126   :  { %2050 = vmatpush.bf16.msra.mxu1 %v3442_v43  ;;  %2040 = vmatpush.bf16.msra.mxu0 %v3058_v46  ;;  %v4451_v38 = vld [vmem:[%s6556_s3 + $0x634] sm:$0xf0]  ;;  %v6071_v43 = vpop.f32.mrf.mxu3  ;;  %v6126_v12 = vpop.f32.mrf.mxu2  ;;  %v3411_v36 = vld [vmem:[%s6556_s3 + $0x3b8] sm:$0xf0] }
 0x127   :  { %v3281_v45 = vld [vmem:[%s6556_s3 + $0x298] sm:$0xf]  ;;  %v3730_v50 = vor.u32 %v4451_v38, %v3729_v37  ;;  %v3606_v37 = vor.u32 %v4415_v26, %v3603_v27  ;;  %v4271_v38 = vld [vmem:[%s6556_s3 + $0x9c] sm:$0xf] }
 0x128   :  { %2067 = vmatpush.bf16.msrb.mxu2 %v3602_v49  ;;  %2081 = vmatpush.bf16.msrb.mxu3 %v3858_v52  ;;  %v4339_v46 = vld [vmem:[%s6556_s3 + $0x2b4] sm:$0xf0]  ;;  %v6082_v49 = vpop.f32.mrf.mxu0  ;;  %v4295_v52 = vld [vmem:[%s6556_s3 + $0x15c] sm:$0xf] }
 0x129   :  { %v3249_v62 = vld [vmem:[%s6556_s3 + $0x258] sm:$0xf]  ;;  %v3126_v1 = vor.u32 %v4295_v52, %v3123_v55  ;;  %v3574_v55 = vor.u32 %v4407_v42, %v3571_v44  ;;  %v4383_v27 = vld [vmem:[%s6556_s3 + $0x41c] sm:$0xf] }
 0x12a   :  { %2051 = vmatpush.bf16.msra.mxu1 %v3410_v57  ;;  %2041 = vmatpush.bf16.msra.mxu0 %v3026_v60  ;;  %v3282_v57 = vor.u32 %v4339_v46, %v3281_v45  ;;  %v4495_v60 = vld [vmem:[%s6556_s3 + $0x79c] sm:$0xf]  ;;  %v6109_v0 = vpop.f32.mrf.mxu1  ;;  %v3217_v14 = vld [vmem:[%s6556_s3 + $0x218] sm:$0xf] }
 0x12b   :  { %v4323_v15 = vld [vmem:[%s6556_s3 + $0x234] sm:$0xf0]  ;;  %v4471_v46 = vld [vmem:[%s6556_s3 + $0x6dc] sm:$0xf] }
 0x12c   :  { %2068 = vmatpush.bf16.msrb.mxu2 %v3570_v63  ;;  %2082 = vmatpush.bf16.msrb.mxu3 %v3826_v2  ;;  %v4331_v63 = vld [vmem:[%s6556_s3 + $0x274] sm:$0xf0]  ;;  %v3670_v2 = vor.u32 %v4431_v58, %v3667_v59  ;;  %v4399_v59 = vld [vmem:[%s6556_s3 + $0x49c] sm:$0xf] }
 0x12d   :  { %v3250_v6 = vor.u32 %v4331_v63, %v3249_v62  ;;  %v4463_v63 = vld [vmem:[%s6556_s3 + $0x69c] sm:$0xf] }
 0x12e   :  { %2052 = vmatpush.bf16.msra.mxu1 %v3378_v5  ;;  %2042 = vmatpush.bf16.msra.mxu0 %v2994_v10  ;;  %v3926_v5 = vor.u32 %v4495_v60, %v3923_v61  ;;  %v3635_v10 = vld [vmem:[%s6556_s3 + $0x578] sm:$0xf0]  ;;  %v6145_v18 = vpop.f32.mrf.mxu3  ;;  %v6199_v52 = vpop.f32.mrf.mxu2 }
 0x12f   :  { %v3638_v20 = vor.u32 %v4423_v7, %v3635_v10  ;;  %v3539_v60 = vld [vmem:[%s6556_s3 + $0x4b8] sm:$0xf0] }
 0x130   :  { %2069 = vmatpush.bf16.msrb.mxu2 %v3538_v13  ;;  %2083 = vmatpush.bf16.msrb.mxu3 %v3794_v17  ;;  %v3891_v13 = vld [vmem:[%s6556_s3 + $0x778] sm:$0xf0] }
 0x131   :  { %v4375_v17 = vld [vmem:[%s6556_s3 + $0x3dc] sm:$0xf]  ;;  %v3894_v24 = vor.u32 %v4487_v11, %v3891_v13 }
 0x132   :  { %2053 = vmatpush.bf16.msra.mxu1 %v3346_v22  ;;  %2043 = vmatpush.bf16.msra.mxu0 %v2962_v25  ;;  %v4279_v22 = vld [vmem:[%s6556_s3 + $0xdc] sm:$0xf]  ;;  %v3218_v25 = vor.u32 %v4323_v15, %v3217_v14  ;;  %v6179_v40 = vpop.f32.mrf.mxu1  ;;  %v3350_v15 = vor.u32 %v4351_v3, %v3347_v4 }
 0x133   :  { %v3062_v33 = vor.u32 %v4279_v22, %v3059_v23  ;;  %v4255_v7 = vld [vmem:[%s6556_s3 + $0x1c] sm:$0xf] }
 0x134   :  { %2070 = vmatpush.bf16.msrb.mxu2 %v3506_v30  ;;  %2084 = vmatpush.bf16.msrb.mxu3 %v3762_v35  ;;  %v3446_v30 = vor.u32 %v4375_v17, %v3443_v9  ;;  %v4367_v35 = vld [vmem:[%s6556_s3 + $0x39c] sm:$0xf] }
 0x135   :  { %2044 = vmatmul.bf16.vlgmr.msra.gmra.mxu0 %v5075_v29  ;;  %v3414_v45 = vor.u32 %v4367_v35, %v3411_v36  ;;  %v2963_v10 = vld [vmem:[%s6556_s3 + $0x38] sm:$0xf0] }
 0x136   :  { %2092 = vmatpush.bf16.msrb.mxu0 %v3190_v28  ;;  %2054 = vmatpush.bf16.msra.mxu1 %v3314_v39  ;;  %v6159_v28 = vpop.f32.mrf.mxu0  ;;  %v3027_v39 = vld [vmem:[%s6556_s3 + $0xb8] sm:$0xf0]  ;;  %v6214_v61 = vpop.f32.mrf.mxu3 }
 0x137   :  { %v4391_v13 = vld [vmem:[%s6556_s3 + $0x45c] sm:$0xf]  ;;  %v6265_v31 = vpop.f32.mrf.mxu2 }
 0x138   :  { %2071 = vmatpush.bf16.msrb.mxu2 %v3474_v48  ;;  %2085 = vmatpush.bf16.msrb.mxu3 %v3730_v50  ;;  %v3030_v48 = vor.u32 %v4271_v38, %v3027_v39  ;;  %v4359_v50 = vld [vmem:[%s6556_s3 + $0x35c] sm:$0xf]  ;;  %v4514_v39 = vld [vmem:[%s6558_s5 + $0x30] sm:$0xff] }
 0x139   :  { %v3507_v14 = vld [vmem:[%s6556_s3 + $0x478] sm:$0xf0] }
 0x13a   :  { %2093 = vmatpush.bf16.msrb.mxu0 %v3158_v47  ;;  %2055 = vmatpush.bf16.msra.mxu1 %v3282_v57  ;;  %v3827_v47 = vld [vmem:[%s6556_s3 + $0x6f8] sm:$0xf0]  ;;  %v6248_v9 = vpop.f32.mrf.mxu1 }
 0x13b   :  { %2072 = vmatmul.bf16.vlgmr.msrb.gmra.mxu2 %v5106_v53  ;;  %2086 = vmatmul.bf16.vlgmr.msrb.gmra.mxu3 %v5108_v54  ;;  %v2995_v57 = vld [vmem:[%s6556_s3 + $0x78] sm:$0xf0]  ;;  %v3830_v58 = vor.u32 %v4471_v46, %v3827_v47 }
 0x13c   :  { %2120 = vmatpush.bf16.msra.mxu2 %v3702_v51  ;;  %2134 = vmatpush.bf16.msra.mxu3 %v3958_v56  ;;  %v3379_v51 = vld [vmem:[%s6556_s3 + $0x378] sm:$0xf0] }
 0x13d   :  { %v4263_v56 = vld [vmem:[%s6556_s3 + $0x5c] sm:$0xf]  ;;  %v3382_v62 = vor.u32 %v4359_v50, %v3379_v51 }
 0x13e   :  { %2094 = vmatpush.bf16.msrb.mxu0 %v3126_v1  ;;  %2056 = vmatpush.bf16.msra.mxu1 %v3250_v6  ;;  %v3795_v1 = vld [vmem:[%s6556_s3 + $0x6b8] sm:$0xf0]  ;;  %v3542_v6 = vor.u32 %v4399_v59, %v3539_v60  ;;  %v6279_v38 = vpop.f32.mrf.mxu3 }
 0x13f   :  { %v3798_v11 = vor.u32 %v4463_v63, %v3795_v1  ;;  %v3763_v17 = vld [vmem:[%s6556_s3 + $0x678] sm:$0xf0]  ;;  %v4512_v63 = vld [vmem:[%s6558_s5 + $0x20] sm:$0xff] }
 0x140   :  { %2121 = vmatpush.bf16.msra.mxu2 %v3670_v2  ;;  %2135 = vmatpush.bf16.msra.mxu3 %v3926_v5  ;;  %v2998_v2 = vor.u32 %v4263_v56, %v2995_v57  ;;  %v6228_v5 = vpop.f32.mrf.mxu0  ;;  %v4343_v22 = vld [vmem:[%s6556_s3 + $0x2dc] sm:$0xf]  ;;  %v6306_v56 = vld [vmem:[%s6559_s4] sm:$0xff] }
 0x141   :  { %v3315_v23 = vld [vmem:[%s6556_s3 + $0x2f8] sm:$0xf0]  ;;  %v404_v1 = vperm.slane %v6306_v56, 0 }
 0x142   :  { %2095 = vmatpush.bf16.msrb.mxu0 %v3094_v16  ;;  %2057 = vmatpush.bf16.msra.mxu1 %v3218_v25  ;;  %v4455_v16 = vld [vmem:[%s6556_s3 + $0x65c] sm:$0xf]  ;;  %v3510_v25 = vor.u32 %v4391_v13, %v3507_v14  ;;  %v3318_v32 = vor.u32 %v4343_v22, %v3315_v23  ;;  %v1835_v51 = vpop.f32.mrf.mxu1  ;;  %v4528_v14 = vld [vmem:[%s6558_s5 + $0xa0] sm:$0xff] }
 0x143   :  { %v3766_v26 = vor.u32 %v4455_v16, %v3763_v17  ;;  %v3731_v35 = vld [vmem:[%s6556_s3 + $0x638] sm:$0xf0]  ;;  %v1712_v4 = vadd.f32 %v6082_v49, %v404_v1  ;;  %v406_v49 = vperm.slane %v6306_v56, 2 }
 0x144   :  { %2122 = vmatpush.bf16.msra.mxu2 %v3638_v20  ;;  %2136 = vmatpush.bf16.msra.mxu3 %v3894_v24  ;;  %v2966_v20 = vor.u32 %v4255_v7, %v2963_v10  ;;  %v4515_v24 = vld [vmem:[%s6558_s5 + $0x38] sm:$0xff] }
 0x145   :  { %2058 = vmatmul.bf16.vlgmr.msra.gmra.mxu1 %v5163_v19  ;;  %v4335_v36 = vld [vmem:[%s6556_s3 + $0x29c] sm:$0xf]  ;;  %v1726_v13 = vadd.f32 %v6109_v0, %v1712_v4 }
 0x146   :  { %2106 = vmatpush.bf16.msrb.mxu1 %v3446_v30  ;;  %2096 = vmatpush.bf16.msrb.mxu0 %v3062_v33  ;;  %v3475_v30 = vld [vmem:[%s6556_s3 + $0x438] sm:$0xf0] }
 0x147   :  { %v4447_v33 = vld [vmem:[%s6556_s3 + $0x61c] sm:$0xf]  ;;  %v1740_v22 = vadd.f32 %v6126_v12, %v1726_v13 }
 0x148   :  { %2123 = vmatpush.bf16.msra.mxu2 %v3606_v37  ;;  %2137 = vmatpush.bf16.msra.mxu3 %v3862_v41  ;;  %v3283_v37 = vld [vmem:[%s6556_s3 + $0x2b8] sm:$0xf0]  ;;  %v3478_v41 = vor.u32 %v4383_v27, %v3475_v30  ;;  %v3734_v42 = vor.u32 %v4447_v33, %v3731_v35  ;;  %v4509_v33 = vld [vmem:[%s6558_s5 + $0x8] sm:$0xff] }
 0x149   :  { %v4531_v44 = vld [vmem:[%s6558_s5 + $0xb8] sm:$0xff]  ;;  %v3286_v46 = vor.u32 %v4335_v36, %v3283_v37  ;;  %v1754_v35 = vadd.f32 %v6145_v18, %v1740_v22  ;;  %v4534_v37 = vld [vmem:[%s6558_s5 + $0xd0] sm:$0xff]  ;;  %v4520_v18 = vld [vmem:[%s6558_s5 + $0x60] sm:$0xff] }
 0x14a   :  { %2107 = vmatpush.bf16.msrb.mxu1 %v3414_v45  ;;  %2097 = vmatpush.bf16.msrb.mxu0 %v3030_v48  ;;  %v1821_v45 = vpop.f32.mrf.mxu0  ;;  %v4539_v47 = vld [vmem:[%s6558_s5 + $0xf8] sm:$0xff]  ;;  %v1837_v17 = vpop.f32.mrf.mxu1 }
 0x14b   :  { %v4327_v48 = vld [vmem:[%s6556_s3 + $0x25c] sm:$0xf]  ;;  %v1822_v23 = vadd.f32 %v1821_v45, %v406_v49  ;;  %v4508_v45 = vld [vmem:[%s6558_s5] sm:$0xff] }
 0x14c   :  { %2124 = vmatpush.bf16.msra.mxu2 %v3574_v55  ;;  %2138 = vmatpush.bf16.msra.mxu3 %v3830_v58  ;;  %v3251_v50 = vld [vmem:[%s6556_s3 + $0x278] sm:$0xf0]  ;;  %v4530_v55 = vld [vmem:[%s6558_s5 + $0xb0] sm:$0xff] }
 0x14d   :  { %v3254_v57 = vor.u32 %v4327_v48, %v3251_v50  ;;  %v4538_v58 = vld [vmem:[%s6558_s5 + $0xf0] sm:$0xff]  ;;  %v4319_v59 = vld [vmem:[%s6556_s3 + $0x21c] sm:$0xf]  ;;  %v1836_v12 = vadd.f32 %v1835_v51, %v1822_v23 }
 0x14e   :  { %2108 = vmatpush.bf16.msrb.mxu1 %v3382_v62  ;;  %2098 = vmatpush.bf16.msrb.mxu0 %v2998_v2  ;;  %v3219_v60 = vld [vmem:[%s6556_s3 + $0x238] sm:$0xf0]  ;;  %v1849_v62 = vpop.f32.mrf.mxu2  ;;  %v6326_v2 = vpop.f32.mrf.mxu3 }
 0x14f   :  { %v3222_v3 = vor.u32 %v4319_v59, %v3219_v60  ;;  %v4511_v10 = vld [vmem:[%s6558_s5 + $0x18] sm:$0xff] }
 0x150   :  { %2125 = vmatpush.bf16.msra.mxu2 %v3542_v6  ;;  %2139 = vmatpush.bf16.msra.mxu3 %v3798_v11  ;;  %v4523_v6 = vld [vmem:[%s6558_s5 + $0x78] sm:$0xff]  ;;  %v1710_v11 = vadd.f32 %v6002_v8, %v404_v1  ;;  %v4522_v8 = vld [vmem:[%s6558_s5 + $0x70] sm:$0xff] }
 0x151   :  { %v4519_v59 = vld [vmem:[%s6558_s5 + $0x58] sm:$0xff] }
 0x152   :  { %2109 = vmatpush.bf16.msrb.mxu1 %v3350_v15  ;;  %2099 = vmatpush.bf16.msrb.mxu0 %v2966_v20  ;;  %v1823_v7 = vpop.f32.mrf.mxu0  ;;  %v4536_v15 = vld [vmem:[%s6558_s5 + $0xe0] sm:$0xff]  ;;  %v1724_v16 = vadd.f32 %v6028_v21, %v1710_v11  ;;  %v4510_v20 = vld [vmem:[%s6558_s5 + $0x10] sm:$0xff]  ;;  %v4527_v21 = vld [vmem:[%s6558_s5 + $0x98] sm:$0xff] }
 0x153   :  { %v1824_v0 = vadd.f32 %v1823_v7, %v406_v49 }
 0x154   :  { %2126 = vmatpush.bf16.msra.mxu2 %v3510_v25  ;;  %2140 = vmatpush.bf16.msra.mxu3 %v3766_v26  ;;  %v4535_v26 = vld [vmem:[%s6558_s5 + $0xd8] sm:$0xff]  ;;  %v1738_v27 = vadd.f32 %v6051_v34, %v1724_v16  ;;  %v4526_v34 = vld [vmem:[%s6558_s5 + $0x90] sm:$0xff] }
 0x155   :  { %2100 = vmatmul.bf16.vlgmr.msrb.gmra.mxu0 %v5075_v29  ;;  %v4513_v29 = vld [vmem:[%s6558_s5 + $0x28] sm:$0xff]  ;;  %v1838_v25 = vadd.f32 %v1837_v17, %v1824_v0 }
 0x156   :  { %2688 = vmatpush.bf16.msra.mxu0 %v4515_v24  ;;  %2110 = vmatpush.bf16.msrb.mxu1 %v3318_v32  ;;  %v1851_v24 = vpop.f32.mrf.mxu2  ;;  %v1865_v30 = vpop.f32.mrf.mxu3 }
 0x157   :  { %v1852_v36 = vadd.f32 %v1851_v24, %v1838_v25  ;;  %v4516_v24 = vld [vmem:[%s6558_s5 + $0x40] sm:$0xff] }
 0x158   :  { %2127 = vmatpush.bf16.msra.mxu2 %v3478_v41  ;;  %2141 = vmatpush.bf16.msra.mxu3 %v3734_v42  ;;  %v407_v41 = vperm.slane %v6306_v56, 3  ;;  %v405_v42 = vperm.slane %v6306_v56, 1 }
 0x159   :  { %v1866_v50 = vadd.f32 %v1865_v30, %v1852_v36  ;;  %v4541_v36 = vld [vmem:[%s6558_s5 + $0x108] sm:$0xff] }
 0x15a   :  { %2689 = vmatpush.bf16.msra.mxu0 %v4514_v39  ;;  %2111 = vmatpush.bf16.msrb.mxu1 %v3286_v46  ;;  %v1877_v32 = vpop.f32.mrf.mxu0  ;;  %v1752_v39 = vadd.f32 %v6071_v43, %v1738_v27  ;;  %v2156_v46 = vmax.f32 %v1754_v35, 0.0  ;;  %v4525_v43 = vld [vmem:[%s6558_s5 + $0x88] sm:$0xff]  ;;  %v1768_v48 = vadd.f32 %v6228_v5, %v405_v42  ;;  %v1766_v60 = vadd.f32 %v6159_v28, %v405_v42 }
 0x15b   :  { %2128 = vmatmul.bf16.vlgmr.msra.gmra.mxu2 %v5106_v53  ;;  %2142 = vmatmul.bf16.vlgmr.msra.gmra.mxu3 %v5108_v54  ;;  %v4529_v53 = vld [vmem:[%s6558_s5 + $0xa8] sm:$0xff]  ;;  %v2158_v4 = vmax.f32 %v1866_v50, 0.0 }
 0x15c   :  { %2716 = vmatpush.bf16.msrb.mxu2 %v4531_v44  ;;  %2730 = vmatpush.bf16.msrb.mxu3 %v4539_v47  ;;  %v4537_v54 = vld [vmem:[%s6558_s5 + $0xe8] sm:$0xff]  ;;  %v1850_v44 = vadd.f32 %v1849_v62, %v1836_v12  ;;  %v4547_v47 = vld [vmem:[%s6558_s5 + $0x138] sm:$0xff]  ;;  %v1782_v62 = vadd.f32 %v6248_v9, %v1768_v48  ;;  %v1780_v28 = vadd.f32 %v6179_v40, %v1766_v60  ;;  %v4550_v48 = vld [vmem:[%s6558_s5 + $0x150] sm:$0xff] }
 0x15d   :  { %v4545_v40 = vld [vmem:[%s6558_s5 + $0x128] sm:$0xff] }
 0x15e   :  { %2690 = vmatpush.bf16.msra.mxu0 %v4513_v29  ;;  %2112 = vmatpush.bf16.msrb.mxu1 %v3254_v57  ;;  %v1905_v29 = vpop.f32.mrf.mxu2  ;;  %v2148_v57 = vmax.f32 %v1752_v39, 0.0  ;;  %v1864_v5 = vadd.f32 %v6326_v2, %v1850_v44  ;;  %v4532_v2 = vld [vmem:[%s6558_s5 + $0xc0] sm:$0xff]  ;;  %v1796_v7 = vadd.f32 %v6265_v31, %v1782_v62  ;;  %v4517_v31 = vld [vmem:[%s6558_s5 + $0x48] sm:$0xff] }
 0x15f   :  { %v4553_v35 = vld [vmem:[%s6558_s5 + $0x168] sm:$0xff]  ;;  %v4552_v39 = vld [vmem:[%s6558_s5 + $0x160] sm:$0xff] }
 0x160   :  { %2717 = vmatpush.bf16.msrb.mxu2 %v4530_v55  ;;  %2731 = vmatpush.bf16.msrb.mxu3 %v4538_v58  ;;  %v4533_v55 = vld [vmem:[%s6558_s5 + $0xc8] sm:$0xff]  ;;  %v1878_v58 = vadd.f32 %v1877_v32, %v407_v41  ;;  %v2164_v1 = vpack.c.bf16 %v2156_v46, %v2148_v57  ;;  %v1810_v17 = vadd.f32 %v6279_v38, %v1796_v7  ;;  %v4555_v38 = vld [vmem:[%s6558_s5 + $0x178] sm:$0xff]  ;;  %v4554_v32 = vld [vmem:[%s6558_s5 + $0x170] sm:$0xff] }
 0x161   :  { %v4549_v57 = vld [vmem:[%s6558_s5 + $0x148] sm:$0xff] }
 0x162   :  { %2691 = vmatpush.bf16.msra.mxu0 %v4512_v63  ;;  %2113 = vmatpush.bf16.msrb.mxu1 %v3222_v3  ;;  %v1891_v51 = vpop.f32.mrf.mxu1  ;;  %v1919_v63 = vpop.f32.mrf.mxu3  ;;  %v4524_v3 = vld [vmem:[%s6558_s5 + $0x80] sm:$0xff]  ;;  %v2157_v25 = vmax.f32 %v1810_v17, 0.0 }
 0x163   :  { %v1879_v9 = vpop.f32.mrf.mxu0 }
 0x164   :  { %2718 = vmatpush.bf16.msrb.mxu2 %v4529_v53  ;;  %2732 = vmatpush.bf16.msrb.mxu3 %v4537_v54  ;;  %v1892_v53 = vadd.f32 %v1891_v51, %v1878_v58  ;;  %v4546_v54 = vld [vmem:[%s6558_s5 + $0x130] sm:$0xff]  ;;  %v1880_v11 = vadd.f32 %v1879_v9, %v407_v41  ;;  %v4540_v41 = vld [vmem:[%s6558_s5 + $0x100] sm:$0xff] }
 0x165   :  { %2114 = vmatmul.bf16.vlgmr.msrb.gmra.mxu1 %v5163_v19  ;;  %v4521_v19 = vld [vmem:[%s6558_s5 + $0x68] sm:$0xff] }
 0x166   :  { %2702 = vmatpush.bf16.msra.mxu1 %v4523_v6  ;;  %2692 = vmatpush.bf16.msra.mxu0 %v4511_v10  ;;  %v4518_v6 = vld [vmem:[%s6558_s5 + $0x50] sm:$0xff]  ;;  %v2150_v10 = vmax.f32 %v1864_v5, 0.0  ;;  %v1906_v13 = vadd.f32 %v1905_v29, %v1892_v53 }
 0x168   :  { %2719 = vmatpush.bf16.msrb.mxu2 %v4528_v14  ;;  %2733 = vmatpush.bf16.msrb.mxu3 %v4536_v15  ;;  %v1794_v14 = vadd.f32 %v6199_v52, %v1780_v28  ;;  %v2166_v49 = vpack.c.bf16 %v2158_v4, %v2150_v10  ;;  %v1920_v0 = vadd.f32 %v1919_v63, %v1906_v13  ;;  %v4544_v52 = vld [vmem:[%s6558_s5 + $0x120] sm:$0xff]  ;;  %v4562_v28 = vld [vmem:[%s6558_s5 + $0x1b0] sm:$0xff]  ;;  %v4561_v4 = vld [vmem:[%s6558_s5 + $0x1a8] sm:$0xff] }
 0x169   :  { %v4548_v63 = vld [vmem:[%s6558_s5 + $0x140] sm:$0xff] }
 0x16a   :  { %2703 = vmatpush.bf16.msra.mxu1 %v4522_v8  ;;  %2693 = vmatpush.bf16.msra.mxu0 %v4510_v20  ;;  %v1893_v15 = vpop.f32.mrf.mxu1  ;;  %v1907_v8 = vpop.f32.mrf.mxu2  ;;  %v1808_v22 = vadd.f32 %v6214_v61, %v1794_v14 }
 0x16b   :  { %v1894_v16 = vadd.f32 %v1893_v15, %v1880_v11  ;;  %v4559_v11 = vld [vmem:[%s6558_s5 + $0x198] sm:$0xff]  ;;  %v4558_v15 = vld [vmem:[%s6558_s5 + $0x190] sm:$0xff] }
 0x16c   :  { %2720 = vmatpush.bf16.msrb.mxu2 %v4527_v21  ;;  %2734 = vmatpush.bf16.msrb.mxu3 %v4535_v26  ;;  %v1921_v21 = vpop.f32.mrf.mxu3  ;;  %v2151_v26 = vmax.f32 %v1920_v0, 0.0  ;;  %v2149_v61 = vmax.f32 %v1808_v22, 0.0 }
 0x16d   :  { %v1908_v20 = vadd.f32 %v1907_v8, %v1894_v16  ;;  %v4557_v8 = vld [vmem:[%s6558_s5 + $0x188] sm:$0xff] }
 0x16e   :  { %2704 = vmatpush.bf16.msra.mxu1 %v4521_v19  ;;  %2694 = vmatpush.bf16.msra.mxu0 %v4509_v33  ;;  %v4543_v19 = vld [vmem:[%s6558_s5 + $0x118] sm:$0xff]  ;;  %v2165_v30 = vpack.c.bf16 %v2157_v25, %v2149_v61  ;;  %v4542_v33 = vld [vmem:[%s6558_s5 + $0x110] sm:$0xff]  ;;  %v4569_v61 = vld [vmem:[%s6558_s5 + $0x1e8] sm:$0xff] }
 0x16f   :  { %v1922_v23 = vadd.f32 %v1921_v21, %v1908_v20  ;;  %v4571_v25 = vld [vmem:[%s6558_s5 + $0x1f8] sm:$0xff] }
 0x170   :  { %2721 = vmatpush.bf16.msrb.mxu2 %v4526_v34  ;;  %2735 = vmatpush.bf16.msrb.mxu3 %v4534_v37  ;;  %v408_v37 = vperm.slane %v6306_v56, 4 }
 0x171   :  { %v2159_v27 = vmax.f32 %v1922_v23, 0.0  ;;  %v4556_v23 = vld [vmem:[%s6558_s5 + $0x180] sm:$0xff] }
 0x172   :  { %2705 = vmatpush.bf16.msra.mxu1 %v4520_v18  ;;  %2695 = vmatpush.bf16.msra.mxu0 %v4508_v45  ;;  %v1933_v34 = vpop.f32.mrf.mxu0  ;;  %v4551_v45 = vld [vmem:[%s6558_s5 + $0x158] sm:$0xff] }
 0x173   :  { %v2167_v12 = vpack.c.bf16 %v2159_v27, %v2151_v26  ;;  %v1934_v44 = vadd.f32 %v1933_v34, %v408_v37  ;;  %v4567_v34 = vld [vmem:[%s6558_s5 + $0x1d8] sm:$0xff] }
 0x174   :  { %2722 = vmatpush.bf16.msrb.mxu2 %v4525_v43  ;;  %2736 = vmatpush.bf16.msrb.mxu3 %v4533_v55 }
 0x175   :  { %2696 = vmatmul.bf16.vlgmr.msra.gmra.mxu0 %v2164_v1  ;;  %v4563_v1 = vld [vmem:[%s6558_s5 + $0x1b8] sm:$0xff] }
 0x176   :  { %2744 = vmatpush.bf16.msrb.mxu0 %v4547_v47  ;;  %2706 = vmatpush.bf16.msra.mxu1 %v4519_v59 }
 0x178   :  { %2723 = vmatpush.bf16.msrb.mxu2 %v4524_v3  ;;  %2737 = vmatpush.bf16.msrb.mxu3 %v4532_v2  ;;  %v4560_v2 = vld [vmem:[%s6558_s5 + $0x1a0] sm:$0xff] }
 0x17a   :  { %2745 = vmatpush.bf16.msrb.mxu0 %v4546_v54  ;;  %2707 = vmatpush.bf16.msra.mxu1 %v4518_v6  ;;  %v1935_v47 = vpop.f32.mrf.mxu0  ;;  %v409_v6 = vperm.slane %v6306_v56, 5 }
 0x17b   :  { %2724 = vmatmul.bf16.vlgmr.msrb.gmra.mxu2 %v2166_v49  ;;  %2738 = vmatmul.bf16.vlgmr.msrb.gmra.mxu3 %v2167_v12  ;;  %v1936_v50 = vadd.f32 %v1935_v47, %v408_v37 }
 0x17c   :  { %2772 = vmatpush.bf16.msra.mxu2 %v4563_v1  ;;  %2786 = vmatpush.bf16.msra.mxu3 %v4571_v25 }
 0x17e   :  { %2746 = vmatpush.bf16.msrb.mxu0 %v4545_v40  ;;  %2708 = vmatpush.bf16.msra.mxu1 %v4517_v31  ;;  %v1961_v18 = vpop.f32.mrf.mxu2  ;;  %v1975_v46 = vpop.f32.mrf.mxu3 }
 0x180   :  { %2773 = vmatpush.bf16.msra.mxu2 %v4562_v28 }
 0x182   :  { %2747 = vmatpush.bf16.msrb.mxu0 %v4544_v52  ;;  %2709 = vmatpush.bf16.msra.mxu1 %v4516_v24  ;;  %v1947_v42 = vpop.f32.mrf.mxu1 }
 0x183   :  { %v1948_v43 = vadd.f32 %v1947_v42, %v1934_v44 }
 0x184   :  { %2774 = vmatpush.bf16.msra.mxu2 %v4561_v4 }
 0x185   :  { %2710 = vmatmul.bf16.vlgmr.msra.gmra.mxu1 %v2165_v30  ;;  %v1962_v29 = vadd.f32 %v1961_v18, %v1948_v43  ;;  %v4568_v30 = vld [vmem:[%s6558_s5 + $0x1e0] sm:$0xff]  ;;  %v4566_v18 = vld [vmem:[%s6558_s5 + $0x1d0] sm:$0xff] }
 0x186   :  { %2758 = vmatpush.bf16.msrb.mxu1 %v4555_v38  ;;  %2748 = vmatpush.bf16.msrb.mxu0 %v4543_v19  ;;  %v1963_v58 = vpop.f32.mrf.mxu2  ;;  %v1977_v62 = vpop.f32.mrf.mxu3  ;;  %v4570_v19 = vld [vmem:[%s6558_s5 + $0x1f0] sm:$0xff] }
 0x187   :  { %v1976_v59 = vadd.f32 %v1975_v46, %v1962_v29  ;;  %2787 = vmatpush.bf16.msra.mxu3 %v4570_v19  ;;  %v4565_v46 = vld [vmem:[%s6558_s5 + $0x1c8] sm:$0xff] }
 0x188   :  { %2775 = vmatpush.bf16.msra.mxu2 %v4560_v2 }
 0x189   :  { %v2152_v53 = vmax.f32 %v1976_v59, 0.0 }
 0x18a   :  { %2759 = vmatpush.bf16.msrb.mxu1 %v4554_v32  ;;  %2749 = vmatpush.bf16.msrb.mxu0 %v4542_v33  ;;  %v1949_v51 = vpop.f32.mrf.mxu1  ;;  %v410_v32 = vperm.slane %v6306_v56, 6 }
 0x18b   :  { %v1950_v55 = vadd.f32 %v1949_v51, %v1936_v50  ;;  %2788 = vmatpush.bf16.msra.mxu3 %v4569_v61  ;;  %v4564_v51 = vld [vmem:[%s6558_s5 + $0x1c0] sm:$0xff] }
 0x18c   :  { %2776 = vmatpush.bf16.msra.mxu2 %v4559_v11 }
 0x18d   :  { %v1964_v60 = vadd.f32 %v1963_v58, %v1950_v55 }
 0x18e   :  { %2760 = vmatpush.bf16.msrb.mxu1 %v4553_v35  ;;  %2750 = vmatpush.bf16.msrb.mxu0 %v4541_v36 }
 0x18f   :  { %v1978_v5 = vadd.f32 %v1977_v62, %v1964_v60  ;;  %2789 = vmatpush.bf16.msra.mxu3 %v4568_v30  ;;  %v411_v62 = vperm.slane %v6306_v56, 7  ;;  %v4579_v56 = vld [vmem:[%s6562_s7 + $0x38] sm:$0xff] }
 0x190   :  { %2777 = vmatpush.bf16.msra.mxu2 %v4558_v15  ;;  %v4578_v15 = vld [vmem:[%s6562_s7 + $0x30] sm:$0xff] }
 0x191   :  { %v2160_v3 = vmax.f32 %v1978_v5, 0.0 }
 0x192   :  { %2761 = vmatpush.bf16.msrb.mxu1 %v4552_v39  ;;  %2751 = vmatpush.bf16.msrb.mxu0 %v4540_v41  ;;  %v1989_v9 = vpop.f32.mrf.mxu0 }
 0x193   :  { %v2168_v54 = vpack.c.bf16 %v2160_v3, %v2152_v53  ;;  %v1990_v13 = vadd.f32 %v1989_v9, %v409_v6  ;;  %2790 = vmatpush.bf16.msra.mxu3 %v4567_v34 }
 0x194   :  { %2778 = vmatpush.bf16.msra.mxu2 %v4557_v8  ;;  %v4574_v8 = vld [vmem:[%s6562_s7 + $0x10] sm:$0xff] }
 0x195   :  { %2752 = vmatmul.bf16.vlgmr.msrb.gmra.mxu0 %v2168_v54 }
 0x196   :  { %2762 = vmatpush.bf16.msrb.mxu1 %v4551_v45  ;;  %2871 = vmatpush.bf16.msra.mxu0 %v4579_v56 }
 0x197   :  { %2791 = vmatpush.bf16.msra.mxu3 %v4566_v18 }
 0x198   :  { %2779 = vmatpush.bf16.msra.mxu2 %v4556_v23 }
 0x19a   :  { %2763 = vmatpush.bf16.msrb.mxu1 %v4550_v48  ;;  %v1991_v49 = vpop.f32.mrf.mxu0  ;;  %2872 = vmatpush.bf16.msra.mxu0 %v4578_v15 }
 0x19b   :  { %v1992_v16 = vadd.f32 %v1991_v49, %v409_v6  ;;  %2792 = vmatpush.bf16.msra.mxu3 %v4565_v46 }
 0x19e   :  { %2764 = vmatpush.bf16.msrb.mxu1 %v4549_v57  ;;  %v2017_v7 = vpop.f32.mrf.mxu2  ;;  %v2031_v40 = vpop.f32.mrf.mxu3 }
 0x19f   :  { %2793 = vmatpush.bf16.msra.mxu3 %v4564_v51 }
 0x1a2   :  { %2765 = vmatpush.bf16.msrb.mxu1 %v4548_v63  ;;  %v2003_v10 = vpop.f32.mrf.mxu1 }
 0x1a3   :  { %v2004_v14 = vadd.f32 %v2003_v10, %v1990_v13 }
 0x1a5   :  { %v2018_v31 = vadd.f32 %v2017_v7, %v2004_v14 }
 0x1a6   :  { %v2019_v20 = vpop.f32.mrf.mxu2  ;;  %v2033_v21 = vpop.f32.mrf.mxu3 }
 0x1a7   :  { %v2032_v52 = vadd.f32 %v2031_v40, %v2018_v31  ;;  %v4576_v31 = vld [vmem:[%s6562_s7 + $0x20] sm:$0xff] }
 0x1a9   :  { %v2153_v38 = vmax.f32 %v2032_v52, 0.0  ;;  %v4573_v52 = vld [vmem:[%s6562_s7 + $0x8] sm:$0xff] }
 0x1aa   :  { %v2005_v17 = vpop.f32.mrf.mxu1 }
 0x1ab   :  { %v2006_v0 = vadd.f32 %v2005_v17, %v1992_v16  ;;  %v4577_v16 = vld [vmem:[%s6562_s7 + $0x28] sm:$0xff]  ;;  %v4575_v17 = vld [vmem:[%s6562_s7 + $0x18] sm:$0xff] }
 0x1ac   :  { %2873 = vmatpush.bf16.msra.mxu0 %v4577_v16 }
 0x1ad   :  { %v2020_v22 = vadd.f32 %v2019_v20, %v2006_v0 }
 0x1af   :  { %v2034_v24 = vadd.f32 %v2033_v21, %v2020_v22  ;;  %v4572_v21 = vld [vmem:[%s6562_s7] sm:$0xff] }
 0x1b0   :  { %2874 = vmatpush.bf16.msra.mxu0 %v4576_v31 }
 0x1b1   :  { %v2161_v26 = vmax.f32 %v2034_v24, 0.0 }
 0x1b2   :  { %v2045_v12 = vpop.f32.mrf.mxu0 }
 0x1b3   :  { %v2169_v27 = vpack.c.bf16 %v2161_v26, %v2153_v38  ;;  %v2046_v36 = vadd.f32 %v2045_v12, %v410_v32  ;;  %v4580_v38 = vld [vmem:[%s6560_s6] ss:$0 sm:$0xff] }
 0x1b4   :  { %2875 = vmatpush.bf16.msra.mxu0 %v4575_v17 }
 0x1b5   :  { %2766 = vmatmul.bf16.vlgmr.msrb.gmra.mxu1 %v2169_v27 }
 0x1b8   :  { %2876 = vmatpush.bf16.msra.mxu0 %v4574_v8 }
 0x1ba   :  { %v2047_v41 = vpop.f32.mrf.mxu0 }
 0x1bb   :  { %v2048_v42 = vadd.f32 %v2047_v41, %v410_v32 }
 0x1bc   :  { %2877 = vmatpush.bf16.msra.mxu0 %v4573_v52 }
 0x1be   :  { %v2073_v33 = vpop.f32.mrf.mxu2  ;;  %v2087_v37 = vpop.f32.mrf.mxu3 }
 0x1c0   :  { %2878 = vmatpush.bf16.msra.mxu0 %v4572_v21 }
 0x1c2   :  { %v2059_v35 = vpop.f32.mrf.mxu1 }
 0x1c3   :  { %v2060_v39 = vadd.f32 %v2059_v35, %v2046_v36 }
 0x1c5   :  { %v2074_v44 = vadd.f32 %v2073_v33, %v2060_v39 }
 0x1c6   :  { %v2075_v47 = vpop.f32.mrf.mxu2  ;;  %v2089_v29 = vpop.f32.mrf.mxu3 }
 0x1c7   :  { %v2088_v48 = vadd.f32 %v2087_v37, %v2074_v44 }
 0x1c9   :  { %v2154_v57 = vmax.f32 %v2088_v48, 0.0 }
 0x1ca   :  { %v2061_v45 = vpop.f32.mrf.mxu1 }
 0x1cb   :  { %v2062_v43 = vadd.f32 %v2061_v45, %v2048_v42 }
 0x1cd   :  { %v2076_v50 = vadd.f32 %v2075_v47, %v2062_v43 }
 0x1cf   :  { %v2090_v55 = vadd.f32 %v2089_v29, %v2076_v50 }
 0x1d1   :  { %v2162_v58 = vmax.f32 %v2090_v55, 0.0 }
 0x1d2   :  { %v2101_v60 = vpop.f32.mrf.mxu0 }
 0x1d3   :  { %v2170_v59 = vpack.c.bf16 %v2162_v58, %v2154_v57  ;;  %v2102_v1 = vadd.f32 %v2101_v60, %v411_v62  ;;  %v4581_v60 = vld [vmem:[%s6561_s8] ss:$0 sm:$0xff] }
 0x1d5   :  { %2780 = vmatmul.bf16.vlgmr.msra.gmra.mxu2 %v2170_v59 }
 0x1da   :  { %v2103_v54 = vpop.f32.mrf.mxu0 }
 0x1db   :  { %v2104_v28 = vadd.f32 %v2103_v54, %v411_v62 }
 0x1de   :  { %v2129_v5 = vpop.f32.mrf.mxu2  ;;  %v2143_v53 = vpop.f32.mrf.mxu3 }
 0x1e2   :  { %v2115_v63 = vpop.f32.mrf.mxu1 }
 0x1e3   :  { %v2116_v3 = vadd.f32 %v2115_v63, %v2102_v1 }
 0x1e5   :  { %v2130_v4 = vadd.f32 %v2129_v5, %v2116_v3 }
 0x1e6   :  { %v2131_v6 = vpop.f32.mrf.mxu2  ;;  %v2145_v11 = vpop.f32.mrf.mxu3 }
 0x1e7   :  { %v2144_v7 = vadd.f32 %v2143_v53, %v2130_v4 }
 0x1e9   :  { %v2155_v40 = vmax.f32 %v2144_v7, 0.0 }
 0x1ea   :  { %v2117_v9 = vpop.f32.mrf.mxu1 }
 0x1eb   :  { %v2118_v2 = vadd.f32 %v2117_v9, %v2104_v28 }
 0x1ed   :  { %v2132_v10 = vadd.f32 %v2131_v6, %v2118_v2 }
 0x1ef   :  { %v2146_v13 = vadd.f32 %v2145_v11, %v2132_v10 }
 0x1f1   :  { %v2163_v14 = vmax.f32 %v2146_v13, 0.0 }
 0x1f2   :  { %v2697_v0 = vpop.f32.mrf.mxu0 }
 0x1f3   :  { %v2171_v49 = vpack.c.bf16 %v2163_v14, %v2155_v40  ;;  %v2698_v27 = vadd.f32 %v4580_v38, %v2697_v0 }
 0x1f5   :  { %2794 = vmatmul.bf16.vlgmr.msra.gmra.mxu3 %v2171_v49 }
 0x1fa   :  { %v2699_v23 = vpop.f32.mrf.mxu0 }
 0x1fb   :  { %v2700_v61 = vadd.f32 %v4580_v38, %v2699_v23 }
 0x1fe   :  { %v2725_v22 = vpop.f32.mrf.mxu2  ;;  %v2739_v24 = vpop.f32.mrf.mxu3 }
 0x202   :  { %v2711_v20 = vpop.f32.mrf.mxu1 }
 0x203   :  { %v2712_v12 = vadd.f32 %v2711_v20, %v2698_v27 }
 0x205   :  { %v2726_v34 = vadd.f32 %v2725_v22, %v2712_v12 }
 0x206   :  { %v2727_v26 = vpop.f32.mrf.mxu2  ;;  %v2741_v30 = vpop.f32.mrf.mxu3 }
 0x207   :  { %v2740_v37 = vadd.f32 %v2739_v24, %v2726_v34 }
 0x20a   :  { %v2713_v25 = vpop.f32.mrf.mxu1 }
 0x20b   :  { %v2714_v33 = vadd.f32 %v2713_v25, %v2700_v61 }
 0x20d   :  { %v2728_v36 = vadd.f32 %v2727_v26, %v2714_v33 }
 0x20f   :  { %v2742_v18 = vadd.f32 %v2741_v30, %v2728_v36 }
 0x212   :  { %v2753_v19 = vpop.f32.mrf.mxu0 }
 0x213   :  { %v2754_v42 = vadd.f32 %v2753_v19, %v2740_v37 }
 0x21a   :  { %v2755_v39 = vpop.f32.mrf.mxu0 }
 0x21b   :  { %v2756_v45 = vadd.f32 %v2755_v39, %v2742_v18 }
 0x232   :  { %v2767_v32 = vpop.f32.mrf.mxu1 }
 0x233   :  { %v2768_v46 = vadd.f32 %v2767_v32, %v2754_v42 }
 0x23a   :  { %v2769_v44 = vpop.f32.mrf.mxu1 }
 0x23b   :  { %v2770_v47 = vadd.f32 %v2769_v44, %v2756_v45 }
 0x258   :  { %v2781_v35 = vpop.f32.mrf.mxu2 }
 0x259   :  { %v2782_v48 = vadd.f32 %v2781_v35, %v2768_v46 }
 0x260   :  { %v2783_v43 = vpop.f32.mrf.mxu2 }
 0x261   :  { %v2784_v50 = vadd.f32 %v2783_v43, %v2770_v47 }
 0x278   :  { %v2795_v41 = vpop.f32.mrf.mxu3 }
 0x279   :  { %v2796_v29 = vadd.f32 %v2795_v41, %v2782_v48 }
 0x27b   :  { %v2800_v57 = vmax.f32 %v2796_v29, 0.0 }
 0x280   :  { %v2797_v51 = vpop.f32.mrf.mxu3 }
 0x281   :  { %v2798_v55 = vadd.f32 %v2797_v51, %v2784_v50 }
 0x283   :  { %v2801_v58 = vmax.f32 %v2798_v55, 0.0 }
 0x285   :  { %v2802_v59 = vpack.c.bf16 %v2801_v58, %v2800_v57 }
 0x287   :  { %2879 = vmatmul.bf16.vlgmr.msra.gmra.mxu0 %v2802_v59 }
 0x304   :  { %v2880_v62 = vpop.f32.mrf.mxu0 }
 0x305   :  { %v2881_v5 = vadd.f32 %v4581_v60, %v2880_v62 }
 0x307   :  { %2885 = vmax.xlane.f32.xlu0 %v2881_v5 }
 0x30c   :  { %v2882_v63 = vpop.f32.mrf.mxu0 }
 0x30d   :  { %v2883_v1 = vadd.f32 %v4581_v60, %v2882_v63 }
 0x30f   :  { %2887 = vmax.xlane.f32.xlu0 %v2883_v1 }
 0x37a   :  { %v2886_v53 = vpop.xlane.xlu0 %2885 }
 0x37b   :  { %v2889_v3 = vsub.f32 %v2881_v5, %v2886_v53 }
 0x37d   :  { %v2891_v54 = vmul.f32 1.442695, %v2889_v3 }
 0x37f   :  { %4582 = vpow2.f32 %v2891_v54 }
 0x382   :  { %v2888_v28 = vpop.xlane.xlu0 %2887 }
 0x383   :  { %v2890_v4 = vsub.f32 %v2883_v1, %v2888_v28 }
 0x385   :  { %v4583_v9 = vpop.eup %4582  ;;  %v2893_v2 = vmul.f32 1.442695, %v2890_v4 }
 0x386   :  { %2895 = vadd.xlane.f32.xlu1 %v4583_v9 }
 0x387   :  { %4584 = vpow2.f32 %v2893_v2 }
 0x38d   :  { %v4585_v6 = vpop.eup %4584 }
 0x38e   :  { %2897 = vadd.xlane.f32.xlu1 %v4585_v6 }
 0x3f9   :  { %v2896_v7 = vpop.xlane.xlu1 %2895 }
 0x3fa   :  { %4586 = vlog2.f32 %v2896_v7 }
 0x400   :  { %v4587_v10 = vpop.eup %4586 }
 0x401   :  { %v2900_v11 = vmul.f32 0.6931472, %v4587_v10  ;;  %v2898_v13 = vpop.xlane.xlu1 %2897 }
 0x402   :  { %4588 = vlog2.f32 %v2898_v13 }
 0x403   :  { %v2903_v40 = vsub.f32 %v2889_v3, %v2900_v11 }
 0x405   :  { %2905 = vst [vmem:[%s6563_s9] sm:$0xff] %v2903_v40 }
 0x408   :  { %v4589_v14 = vpop.eup %4588 }
 0x409   :  { %v2902_v49 = vmul.f32 0.6931472, %v4589_v14 }
 0x40b   :  { %v2904_v56 = vsub.f32 %v2890_v4, %v2902_v49 }
 0x40d   :  { %2906 = vst [vmem:[%s6563_s9 + $0x8] sm:$0xff] %v2904_v56 }

</bundles_post_ra>
